<compile_context>
chip_gen: v7x
topology: tpu7x:2x2x1
jax: 0.10.0
libtpu: 0.0.40
codegen_flags: <defaults>
</compile_context>

<pallas_src>
import functools
import numpy as np

import jax
import jax.numpy as jnp
from jax.experimental import pallas as pl
from jax.experimental.pallas import tpu as pltpu

# ------------------------- small model config (ModelArgs) -------------------------
DIM = 32          # params.dim
N_HEADS = 4       # params.n_heads
HEAD_DIM = DIM // N_HEADS
N_LAYERS = 2      # params.n_layers
VOCAB = 64        # params.vocab_size
VOCAB_PAD = 128   # lane-dense vocab projection (zero-padded columns)
MULTIPLE_OF = 16  # params.multiple_of (small version of 256)
NORM_EPS = 1e-4   # params.norm_eps
THETA = 10000.0
B = 2
S = 8
NEG_INF = -1e30   # additive causal mask (exp underflows to exactly 0 in f32)

DP = 128          # lane-padded width of each q/k/v segment


def _ffn_hidden(dim: int, multiple_of: int) -> int:
    hidden = 4 * dim
    hidden = int(2 * hidden / 3)
    return multiple_of * ((hidden + multiple_of - 1) // multiple_of)


HID = _ffn_hidden(DIM, MULTIPLE_OF)   # 96
HID_PAD = 128                         # each SwiGLU half padded to a full lane tile


# ------------------------------- Pallas kernel --------------------------------------
def _rmsnorm(v, w, eps):
    # v: (S, D), w: (1, D)
    ms = jnp.mean(v * v, axis=-1, keepdims=True)
    return v * jax.lax.rsqrt(ms + eps) * w


def llama_fused_kernel(x_ref, cos_ref, sin_ref, mask_ref, bd_ref, gsum_ref,
                       norms_ref, wqkv_ref, wo_ref, w13_ref, w2_ref,
                       fnw_ref, wout_ref,
                       logits_ref, kv_ref,
                       *, n_layers, n_heads, dim, dp, hid_pad, eps, scale):
    """One grid step = one batch element; all transformer layers unrolled in-kernel."""
    x = x_ref[0]                       # (S, D) residual stream (stays on-core)

    # Loop-invariant tables, hoisted above the unrolled layer loop.
    cos = cos_ref[...]                 # (S, Dp)  cos, interleaved layout, zero-padded
    sin = sin_ref[...]                 # (S, Dp)  sign-folded sin (-s even lanes, +s odd)
    mask_t = mask_ref[...]             # (S, H*S) causal mask tiled per head group
    bd = bd_ref[...]                   # (H*S, Dp) block-diagonal head mask
    gsum_m = gsum_ref[...]             # (H*S, H*S) block-diagonal ones (group sums)

    kv_parts = []
    for l in range(n_layers):          # static unroll; weights are VMEM-resident
        norms = norms_ref[l]           # (2, D): row 0 attention_norm, row 1 ffn_norm

        # ------------------------------- attention ----------------------------------
        h = _rmsnorm(x, norms[0:1, :], eps)
        # Fused projection, each segment padded to 128 lanes (aligned slices):
        #   [ q | k | v | q_pair_swapped | k_pair_swapped ]
        qkv = jnp.dot(h, wqkv_ref[l], preferred_element_type=jnp.float32)   # (S, 5*Dp)
        q = qkv[:, 0 * dp:1 * dp]
        k = qkv[:, 1 * dp:2 * dp]
        v = qkv[:, 2 * dp:3 * dp]
        q_sw = qkv[:, 3 * dp:4 * dp]
        k_sw = qkv[:, 4 * dp:5 * dp]
        # Interleaved-pair rotary: purely elementwise (swap folded into the weights).
        q = q * cos + q_sw * sin
        k = k * cos + k_sw * sin

        # Heads-in-lanes attention: replicate K/V along sublanes and mask
        # block-diagonally so every matmul runs at full contraction depth.
        k_rows = jnp.concatenate([k] * n_heads, axis=0) * bd     # (H*S, Dp)
        v_rows = jnp.concatenate([v] * n_heads, axis=0) * bd     # (H*S, Dp)

        s = jnp.einsum("qd,kd->qk", q, k_rows,
                       preferred_element_type=jnp.float32)       # (S, H*S)
        s = s * scale + mask_t
        m = jnp.max(s, axis=-1, keepdims=True)     # per-row max (constant within groups)
        e = jnp.exp(s - m)
        denom = jnp.dot(e, gsum_m, preferred_element_type=jnp.float32)  # per-head sums
        p = e / denom                                                    # exact softmax
        o = jnp.dot(p, v_rows, preferred_element_type=jnp.float32)      # (S, Dp) concat-heads
        x = x + jnp.dot(o, wo_ref[l], preferred_element_type=jnp.float32)

        # ------------------------------- SwiGLU FFN ---------------------------------
        h2 = _rmsnorm(x, norms[1:2, :], eps)
        g13 = jnp.dot(h2, w13_ref[l], preferred_element_type=jnp.float32)  # (S, 2*HP)
        g1 = g13[:, :hid_pad]                     # lane-aligned slices (padding is zero)
        g3 = g13[:, hid_pad:]
        g = (g1 * jax.nn.sigmoid(g1)) * g3
        x = x + jnp.dot(g, w2_ref[l], preferred_element_type=jnp.float32)

        kv_parts.append(k[:, :dim])               # rotated keys  (S, D)
        kv_parts.append(v[:, :dim])               # values        (S, D)

    # Single lane-dense (S, 2*L*D) = (8, 128) KV-cache store.
    kv_ref[0] = jnp.concatenate(kv_parts, axis=-1)

    # Final RMSNorm + lane-dense (vocab-padded) logits.
    hf = _rmsnorm(x, fnw_ref[...], eps)
    logits_ref[0] = jnp.dot(hf, wout_ref[...], preferred_element_type=jnp.float32)


# ------------------------------- host-side precompute --------------------------------
def _rotary_angles(seqlen):
    inv = 1.0 / (THETA ** (jnp.arange(0, HEAD_DIM, 2, dtype=jnp.float32) / HEAD_DIM))
    t = jnp.arange(seqlen, dtype=jnp.float32)
    ang = jnp.outer(t, inv)                                   # (S, hd/2)
    return jnp.cos(ang), jnp.sin(ang)


def precompute_rotary_tables(seqlen):
    """cos / sign-folded-sin tables in the interleaved layout, padded to DP lanes."""
    cos_h, sin_h = _rotary_angles(seqlen)
    cos_full = jnp.tile(jnp.repeat(cos_h, 2, axis=-1), (1, N_HEADS))          # (S, D)
    sin_signed = jnp.stack([-sin_h, sin_h], axis=-1).reshape(seqlen, HEAD_DIM)
    sin_full = jnp.tile(sin_signed, (1, N_HEADS))                             # (S, D)
    pad = ((0, 0), (0, DP - DIM))
    return jnp.pad(cos_full, pad), jnp.pad(sin_full, pad)


def causal_mask(seqlen):
    i = jnp.arange(seqlen)[:, None]
    j = jnp.arange(seqlen)[None, :]
    return jnp.where(j > i, NEG_INF, 0.0).astype(jnp.float32)


def head_block_matrices(seqlen):
    """Block-diagonal head mask (H*S, DP) and block-diagonal ones (H*S, H*S)."""
    r = np.arange(N_HEADS * seqlen)
    c = np.arange(DP)
    bd = ((r[:, None] // seqlen) == (c[None, :] // HEAD_DIM)).astype(np.float32)
    gs = ((r[:, None] // seqlen) == (r[None, :] // seqlen)).astype(np.float32)
    return jnp.asarray(bd), jnp.asarray(gs)


def _pair_swap_perm(dim):
    # columns 2k <-> 2k+1 (interleaved complex pair swap), folded into weights
    return np.arange(dim).reshape(-1, 2)[:, ::-1].reshape(-1)


def _pad_cols(w, width):
    return jnp.pad(w, ((0, 0), (0, width - w.shape[1])))


def _pad_rows(w, height):
    return jnp.pad(w, ((0, height - w.shape[0]), (0, 0)))


def pack_params(params):
    """Stack per-layer weights along a leading layer axis (+ fuse / lane-pad)."""
    perm = _pair_swap_perm(DIM)
    layers = params["layers"]
    norms = jnp.stack([jnp.concatenate([p["attn_norm"], p["ffn_norm"]], axis=0)
                       for p in layers])                                   # (L, 2, D)
    wqkv = jnp.stack([jnp.concatenate(
        [_pad_cols(p["wq"], DP), _pad_cols(p["wk"], DP), _pad_cols(p["wv"], DP),
         _pad_cols(p["wq"][:, perm], DP), _pad_cols(p["wk"][:, perm], DP)], axis=1)
        for p in layers])                                                  # (L, D, 5*DP)
    wo = jnp.stack([_pad_rows(p["wo"], DP) for p in layers])               # (L, DP, D)
    w13 = jnp.stack([jnp.concatenate(
        [_pad_cols(p["w1"], HID_PAD), _pad_cols(p["w3"], HID_PAD)], axis=1)
        for p in layers])                                                  # (L, D, 2*HP)
    w2 = jnp.stack([_pad_rows(p["w2"], HID_PAD) for p in layers])          # (L, HP, D)
    wout = _pad_cols(params["out_w"], VOCAB_PAD)                           # (D, VOCAB_PAD)
    return norms, wqkv, wo, w13, w2, params["norm_w"], wout


# ------------------------------- parameter init --------------------------------------
def init_params(key):
    def nrm(k, shape, scale=0.02):
        return (jax.random.normal(k, shape, jnp.float32) * scale).astype(jnp.float32)

    keys = jax.random.split(key, 2 + N_LAYERS)
    params = {
        "tok_emb": nrm(keys[0], (VOCAB, DIM)),
        "norm_w": jnp.ones((1, DIM), jnp.float32),
        "out_w": nrm(keys[1], (DIM, VOCAB)),
        "layers": [],
    }
    for li in range(N_LAYERS):
        lk = jax.random.split(keys[2 + li], 7)
        params["layers"].append({
            "attn_norm": jnp.ones((1, DIM), jnp.float32),
            "ffn_norm": jnp.ones((1, DIM), jnp.float32),
            "wq": nrm(lk[0], (DIM, DIM)),
            "wk": nrm(lk[1], (DIM, DIM)),
            "wv": nrm(lk[2], (DIM, DIM)),
            "wo": nrm(lk[3], (DIM, DIM)),
            "w1": nrm(lk[4], (DIM, HID)),
            "w2": nrm(lk[5], (HID, DIM)),
            "w3": nrm(lk[6], (DIM, HID)),
        })
    return params


# ------------------------------- full forward (Pallas) -------------------------------
def llama_forward(tokens, params):
    """Equivalent of Llama.forward(tokens) -> (logits, caches)."""
    bsz, seqlen = tokens.shape
    x = params["tok_emb"][tokens]                           # (B, S, D) embedding gather
    cos, sin = precompute_rotary_tables(seqlen)
    mask_t = jnp.tile(causal_mask(seqlen), (1, N_HEADS))    # (S, H*S)
    bd, gsum = head_block_matrices(seqlen)
    norms, wqkv, wo, w13, w2, fnorm, wout = pack_params(params)

    kernel = functools.partial(
        llama_fused_kernel, n_layers=N_LAYERS, n_heads=N_HEADS, dim=DIM, dp=DP,
        hid_pad=HID_PAD, eps=NORM_EPS, scale=1.0 / (HEAD_DIM ** 0.5))

    hs = N_HEADS * seqlen
    out_shape = (
        jax.ShapeDtypeStruct((bsz, seqlen, VOCAB_PAD), jnp.float32),            # logits
        jax.ShapeDtypeStruct((bsz, seqlen, 2 * N_LAYERS * DIM), jnp.float32),   # packed KV
    )
    in_specs = [
        pl.BlockSpec((1, seqlen, DIM), lambda b: (b, 0, 0)),             # embeddings
        pl.BlockSpec((seqlen, DP), lambda b: (0, 0)),                    # rotary cos
        pl.BlockSpec((seqlen, DP), lambda b: (0, 0)),                    # rotary sin
        pl.BlockSpec((seqlen, hs), lambda b: (0, 0)),                    # tiled causal mask
        pl.BlockSpec((hs, DP), lambda b: (0, 0)),                        # block-diag head mask
        pl.BlockSpec((hs, hs), lambda b: (0, 0)),                        # group-sum matrix
        pl.BlockSpec((N_LAYERS, 2, DIM), lambda b: (0, 0, 0)),           # per-layer norms
        pl.BlockSpec((N_LAYERS, DIM, 5 * DP), lambda b: (0, 0, 0)),      # fused qkv(+swap)
        pl.BlockSpec((N_LAYERS, DP, DIM), lambda b: (0, 0, 0)),          # wo (row-padded)
        pl.BlockSpec((N_LAYERS, DIM, 2 * HID_PAD), lambda b: (0, 0, 0)), # fused w1|w3
        pl.BlockSpec((N_LAYERS, HID_PAD, DIM), lambda b: (0, 0, 0)),     # w2
        pl.BlockSpec((1, DIM), lambda b: (0, 0)),                        # final norm w
        pl.BlockSpec((DIM, VOCAB_PAD), lambda b: (0, 0)),                # vocab projection
    ]
    out_specs = (
        pl.BlockSpec((1, seqlen, VOCAB_PAD), lambda b: (b, 0, 0)),
        pl.BlockSpec((1, seqlen, 2 * N_LAYERS * DIM), lambda b: (b, 0, 0)),
    )

    logits_pad, kv = pl.pallas_call(
        kernel,
        out_shape=out_shape,
        grid=(bsz,),
        in_specs=in_specs,
        out_specs=out_specs,
        compiler_params=pltpu.CompilerParams(dimension_semantics=("parallel",)),
    )(x, cos, sin, mask_t, bd, gsum, norms, wqkv, wo, w13, w2, fnorm, wout)

    logits = logits_pad[:, :, :VOCAB]
    caches = []
    for l in range(N_LAYERS):
        k_l = kv[:, :, (2 * l) * DIM:(2 * l + 1) * DIM]
        v_l = kv[:, :, (2 * l + 1) * DIM:(2 * l + 2) * DIM]
        caches.append((k_l.reshape(bsz, seqlen, N_HEADS, HEAD_DIM),
                       v_l.reshape(bsz, seqlen, N_HEADS, HEAD_DIM)))
    return logits, caches


# ------------------------------- pure-JAX reference ----------------------------------
def ref_forward(tokens, params):
    bsz, seqlen = tokens.shape
    cos_h, sin_h = _rotary_angles(seqlen)
    mask = causal_mask(seqlen)
    x = params["tok_emb"][tokens]

    def rmsnorm(v, w):
        return v * jax.lax.rsqrt(jnp.mean(v * v, -1, keepdims=True) + NORM_EPS) * w

    def rope(t):
        t = t.reshape(bsz, seqlen, N_HEADS, HEAD_DIM // 2, 2)
        te, to = t[..., 0], t[..., 1]
        c = cos_h[None, :, None, :]
        s = sin_h[None, :, None, :]
        out = jnp.stack([te * c - to * s, te * s + to * c], axis=-1)
        return out.reshape(bsz, seqlen, N_HEADS, HEAD_DIM)

    caches = []
    for p in params["layers"]:
        h = rmsnorm(x, p["attn_norm"])
        q, k, v = h @ p["wq"], h @ p["wk"], h @ p["wv"]
        qh, kh = rope(q), rope(k)
        vh = v.reshape(bsz, seqlen, N_HEADS, HEAD_DIM)
        qt, kt, vt = (a.transpose(0, 2, 1, 3) for a in (qh, kh, vh))
        scores = jnp.einsum("bhqd,bhkd->bhqk", qt, kt) / np.sqrt(HEAD_DIM) + mask
        attn = jax.nn.softmax(scores, axis=-1)
        out = jnp.einsum("bhqk,bhkd->bhqd", attn, vt).transpose(0, 2, 1, 3)
        out = out.reshape(bsz, seqlen, DIM)
        x = x + out @ p["wo"]
        h2 = rmsnorm(x, p["ffn_norm"])
        g1, g3 = h2 @ p["w1"], h2 @ p["w3"]
        x = x + ((g1 * jax.nn.sigmoid(g1)) * g3) @ p["w2"]
        caches.append((kh, vh))
    logits = rmsnorm(x, params["norm_w"]) @ params["out_w"]
    return logits, caches


# ------------------------------------- main -------------------------------------------
if __name__ == "__main__":
    key = jax.random.PRNGKey(0)
    pkey, tkey = jax.random.split(key)
    params = init_params(pkey)
    tokens = jax.random.randint(tkey, (B, S), 0, VOCAB, dtype=jnp.int32)

    logits, caches = llama_forward(tokens, params)
    logits = jax.block_until_ready(logits)
    assert logits.shape == (B, S, VOCAB)

    ref_logits, ref_caches = ref_forward(tokens, params)

    # Tolerances budget for MXU-vs-XLA f32 matmul rounding (observed <=1.5e-4 abs,
    # ~2% rel on near-zero elements); anything semantically wrong blows far past this.
    for (k_p, v_p), (k_r, v_r) in zip(caches, ref_caches):
        np.testing.assert_allclose(np.asarray(k_p), np.asarray(k_r), rtol=5e-2, atol=1e-3)
        np.testing.assert_allclose(np.asarray(v_p), np.asarray(v_r), rtol=5e-2, atol=1e-3)
    np.testing.assert_allclose(np.asarray(logits), np.asarray(ref_logits),
                               rtol=5e-2, atol=3e-3)

    # TODO(synk): Llama.infer / sample_top_p (autoregressive multinomial sampling loop)
    # is host-driven control flow and is not expressed as a Pallas kernel.
    print("KERNEL_OK")
</pallas_src>

<mosaic_0001>
module attributes {stable_mosaic.version = 11 : i64} {
  func.func @llama_fused_kernel(%arg0: i32, %arg1: memref<1x8x32xf32, #tpu.memory_space<vmem>>, %arg2: memref<8x128xf32, #tpu.memory_space<vmem>>, %arg3: memref<8x128xf32, #tpu.memory_space<vmem>>, %arg4: memref<8x32xf32, #tpu.memory_space<vmem>>, %arg5: memref<32x128xf32, #tpu.memory_space<vmem>>, %arg6: memref<32x32xf32, #tpu.memory_space<vmem>>, %arg7: memref<2x2x32xf32, #tpu.memory_space<vmem>>, %arg8: memref<2x32x640xf32, #tpu.memory_space<vmem>>, %arg9: memref<2x128x32xf32, #tpu.memory_space<vmem>>, %arg10: memref<2x32x256xf32, #tpu.memory_space<vmem>>, %arg11: memref<2x128x32xf32, #tpu.memory_space<vmem>>, %arg12: memref<1x32xf32, #tpu.memory_space<vmem>>, %arg13: memref<32x128xf32, #tpu.memory_space<vmem>>, %arg14: memref<1x8x128xf32, #tpu.memory_space<vmem>>, %arg15: memref<1x8x128xf32, #tpu.memory_space<vmem>>) attributes {dimension_semantics = [#tpu.dimension_semantics<parallel>], iteration_bounds = array<i64: 2>, scalar_prefetch = 0 : i64, scratch_operands = 0 : i64, tpu.core_type = #tpu.core_type<tc>, window_params = [{transform_indices = @transform_0, window_bounds = array<i64: 1, 8, 32>}, {pipeline_mode = #tpu.pipeline_mode<synchronous>, transform_indices = @transform_1, window_bounds = array<i64: 8, 128>}, {pipeline_mode = #tpu.pipeline_mode<synchronous>, transform_indices = @transform_2, window_bounds = array<i64: 8, 128>}, {pipeline_mode = #tpu.pipeline_mode<synchronous>, transform_indices = @transform_3, window_bounds = array<i64: 8, 32>}, {pipeline_mode = #tpu.pipeline_mode<synchronous>, transform_indices = @transform_4, window_bounds = array<i64: 32, 128>}, {pipeline_mode = #tpu.pipeline_mode<synchronous>, transform_indices = @transform_5, window_bounds = array<i64: 32, 32>}, {pipeline_mode = #tpu.pipeline_mode<synchronous>, transform_indices = @transform_6, window_bounds = array<i64: 2, 2, 32>}, {pipeline_mode = #tpu.pipeline_mode<synchronous>, transform_indices = @transform_7, window_bounds = array<i64: 2, 32, 640>}, {pipeline_mode = #tpu.pipeline_mode<synchronous>, transform_indices = @transform_8, window_bounds = array<i64: 2, 128, 32>}, {pipeline_mode = #tpu.pipeline_mode<synchronous>, transform_indices = @transform_9, window_bounds = array<i64: 2, 32, 256>}, {pipeline_mode = #tpu.pipeline_mode<synchronous>, transform_indices = @transform_10, window_bounds = array<i64: 2, 128, 32>}, {pipeline_mode = #tpu.pipeline_mode<synchronous>, transform_indices = @transform_11, window_bounds = array<i64: 1, 32>}, {pipeline_mode = #tpu.pipeline_mode<synchronous>, transform_indices = @transform_12, window_bounds = array<i64: 32, 128>}, {transform_indices = @transform_13, window_bounds = array<i64: 1, 8, 128>}, {transform_indices = @transform_14, window_bounds = array<i64: 1, 8, 128>}]} {
    %c0 = arith.constant 0 : index
    %c0_0 = arith.constant 0 : index
    %c0_1 = arith.constant 0 : index
    %0 = vector.load %arg1[%c0, %c0_0, %c0_1] : memref<1x8x32xf32, #tpu.memory_space<vmem>>, vector<1x8x32xf32>
    %1 = vector.shape_cast %0 : vector<1x8x32xf32> to vector<8x32xf32>
    %c0_2 = arith.constant 0 : index
    %c0_3 = arith.constant 0 : index
    %2 = vector.load %arg2[%c0_2, %c0_3] : memref<8x128xf32, #tpu.memory_space<vmem>>, vector<8x128xf32>
    %c0_4 = arith.constant 0 : index
    %c0_5 = arith.constant 0 : index
    %3 = vector.load %arg3[%c0_4, %c0_5] : memref<8x128xf32, #tpu.memory_space<vmem>>, vector<8x128xf32>
    %c0_6 = arith.constant 0 : index
    %c0_7 = arith.constant 0 : index
    %4 = vector.load %arg4[%c0_6, %c0_7] : memref<8x32xf32, #tpu.memory_space<vmem>>, vector<8x32xf32>
    %c0_8 = arith.constant 0 : index
    %c0_9 = arith.constant 0 : index
    %5 = vector.load %arg5[%c0_8, %c0_9] : memref<32x128xf32, #tpu.memory_space<vmem>>, vector<32x128xf32>
    %c0_10 = arith.constant 0 : index
    %c0_11 = arith.constant 0 : index
    %6 = vector.load %arg6[%c0_10, %c0_11] : memref<32x32xf32, #tpu.memory_space<vmem>>, vector<32x32xf32>
    %c0_12 = arith.constant 0 : index
    %c0_13 = arith.constant 0 : index
    %c0_14 = arith.constant 0 : index
    %7 = vector.load %arg7[%c0_12, %c0_13, %c0_14] : memref<2x2x32xf32, #tpu.memory_space<vmem>>, vector<1x2x32xf32>
    %8 = vector.shape_cast %7 : vector<1x2x32xf32> to vector<2x32xf32>
    %9 = vector.extract_strided_slice %8 {offsets = [0, 0], sizes = [1, 32], strides = [1, 1]} : vector<2x32xf32> to vector<1x32xf32>
    %10 = arith.mulf %1, %1 : vector<8x32xf32>
    %cst = arith.constant dense<0.000000e+00> : vector<8xf32>
    %11 = vector.multi_reduction <add>, %10, %cst [1] : vector<8x32xf32> to vector<8xf32>
    %12 = vector.shape_cast %11 : vector<8xf32> to vector<8x1xf32>
    %cst_15 = arith.constant 3.200000e+01 : f32
    %13 = vector.broadcast %cst_15 : f32 to vector<8x1xf32>
    %14 = arith.divf %12, %13 : vector<8x1xf32>
    %cst_16 = arith.constant 9.99999974E-5 : f32
    %15 = vector.broadcast %cst_16 : f32 to vector<8x1xf32>
    %16 = arith.addf %14, %15 : vector<8x1xf32>
    %17 = math.rsqrt %16 : vector<8x1xf32>
    %18 = vector.broadcast %17 : vector<8x1xf32> to vector<8x32xf32>
    %19 = arith.mulf %1, %18 : vector<8x32xf32>
    %20 = vector.broadcast %9 : vector<1x32xf32> to vector<8x32xf32>
    %21 = arith.mulf %19, %20 : vector<8x32xf32>
    %c0_17 = arith.constant 0 : index
    %c0_18 = arith.constant 0 : index
    %c0_19 = arith.constant 0 : index
    %22 = vector.load %arg8[%c0_17, %c0_18, %c0_19] : memref<2x32x640xf32, #tpu.memory_space<vmem>>, vector<1x32x640xf32>
    %23 = vector.shape_cast %22 : vector<1x32x640xf32> to vector<32x640xf32>
    %cst_20 = arith.constant dense<0.000000e+00> : vector<8x640xf32>
    %24 = tpu.matmul %21, %23, %cst_20 {dimension_numbers = #tpu.dot_dimension_numbers<[1], [0], [0], [1], [0, 0, 1, 1], [], []>} : vector<8x32xf32>, vector<32x640xf32>, vector<8x640xf32> -> vector<8x640xf32>
    %25 = vector.extract_strided_slice %24 {offsets = [0, 0], sizes = [8, 128], strides = [1, 1]} : vector<8x640xf32> to vector<8x128xf32>
    %26 = vector.extract_strided_slice %24 {offsets = [0, 128], sizes = [8, 128], strides = [1, 1]} : vector<8x640xf32> to vector<8x128xf32>
    %27 = vector.extract_strided_slice %24 {offsets = [0, 256], sizes = [8, 128], strides = [1, 1]} : vector<8x640xf32> to vector<8x128xf32>
    %28 = vector.extract_strided_slice %24 {offsets = [0, 384], sizes = [8, 128], strides = [1, 1]} : vector<8x640xf32> to vector<8x128xf32>
    %29 = vector.extract_strided_slice %24 {offsets = [0, 512], sizes = [8, 128], strides = [1, 1]} : vector<8x640xf32> to vector<8x128xf32>
    %30 = arith.mulf %25, %2 : vector<8x128xf32>
    %31 = arith.mulf %28, %3 : vector<8x128xf32>
    %32 = arith.addf %30, %31 : vector<8x128xf32>
    %33 = arith.mulf %26, %2 : vector<8x128xf32>
    %34 = arith.mulf %29, %3 : vector<8x128xf32>
    %35 = arith.addf %33, %34 : vector<8x128xf32>
    %36 = tpu.concatenate %35, %35, %35, %35 in 0 : vector<8x128xf32>, vector<8x128xf32>, vector<8x128xf32>, vector<8x128xf32> -> vector<32x128xf32>
    %37 = arith.mulf %36, %5 : vector<32x128xf32>
    %38 = tpu.concatenate %27, %27, %27, %27 in 0 : vector<8x128xf32>, vector<8x128xf32>, vector<8x128xf32>, vector<8x128xf32> -> vector<32x128xf32>
    %39 = arith.mulf %38, %5 : vector<32x128xf32>
    "tpu.trace_start"() <{level = 10 : i32, message = "qd,kd->qk"}> : () -> ()
    %cst_21 = arith.constant dense<0.000000e+00> : vector<8x32xf32>
    %40 = tpu.matmul %32, %37, %cst_21 {dimension_numbers = #tpu.dot_dimension_numbers<[1], [1], [0], [0], [0, 0, 1, 0], [], []>} : vector<8x128xf32>, vector<32x128xf32>, vector<8x32xf32> -> vector<8x32xf32>
    "tpu.trace_stop"() : () -> ()
    %cst_22 = arith.constant 0.353553385 : f32
    %41 = vector.broadcast %cst_22 : f32 to vector<8x32xf32>
    %42 = arith.mulf %40, %41 : vector<8x32xf32>
    %43 = arith.addf %42, %4 : vector<8x32xf32>
    %cst_23 = arith.constant dense<0xFF800000> : vector<8xf32>
    %44 = vector.multi_reduction <maximumf>, %43, %cst_23 [1] : vector<8x32xf32> to vector<8xf32>
    %45 = vector.shape_cast %44 : vector<8xf32> to vector<8x1xf32>
    %46 = vector.broadcast %45 : vector<8x1xf32> to vector<8x32xf32>
    %47 = arith.subf %43, %46 : vector<8x32xf32>
    %48 = math.exp %47 : vector<8x32xf32>
    %cst_24 = arith.constant dense<0.000000e+00> : vector<8x32xf32>
    %49 = tpu.matmul %48, %6, %cst_24 {dimension_numbers = #tpu.dot_dimension_numbers<[1], [0], [0], [1], [0, 0, 1, 1], [], []>} : vector<8x32xf32>, vector<32x32xf32>, vector<8x32xf32> -> vector<8x32xf32>
    %50 = arith.divf %48, %49 : vector<8x32xf32>
    %cst_25 = arith.constant dense<0.000000e+00> : vector<8x128xf32>
    %51 = tpu.matmul %50, %39, %cst_25 {dimension_numbers = #tpu.dot_dimension_numbers<[1], [0], [0], [1], [0, 0, 1, 1], [], []>} : vector<8x32xf32>, vector<32x128xf32>, vector<8x128xf32> -> vector<8x128xf32>
    %c0_26 = arith.constant 0 : index
    %c0_27 = arith.constant 0 : index
    %c0_28 = arith.constant 0 : index
    %52 = vector.load %arg9[%c0_26, %c0_27, %c0_28] : memref<2x128x32xf32, #tpu.memory_space<vmem>>, vector<1x128x32xf32>
    %53 = vector.shape_cast %52 : vector<1x128x32xf32> to vector<128x32xf32>
    %cst_29 = arith.constant dense<0.000000e+00> : vector<8x32xf32>
    %54 = tpu.matmul %51, %53, %cst_29 {dimension_numbers = #tpu.dot_dimension_numbers<[1], [0], [0], [1], [0, 0, 1, 1], [], []>} : vector<8x128xf32>, vector<128x32xf32>, vector<8x32xf32> -> vector<8x32xf32>
    %55 = arith.addf %1, %54 : vector<8x32xf32>
    %56 = vector.extract_strided_slice %8 {offsets = [1, 0], sizes = [1, 32], strides = [1, 1]} : vector<2x32xf32> to vector<1x32xf32>
    %57 = arith.mulf %55, %55 : vector<8x32xf32>
    %cst_30 = arith.constant dense<0.000000e+00> : vector<8xf32>
    %58 = vector.multi_reduction <add>, %57, %cst_30 [1] : vector<8x32xf32> to vector<8xf32>
    %59 = vector.shape_cast %58 : vector<8xf32> to vector<8x1xf32>
    %cst_31 = arith.constant 3.200000e+01 : f32
    %60 = vector.broadcast %cst_31 : f32 to vector<8x1xf32>
    %61 = arith.divf %59, %60 : vector<8x1xf32>
    %cst_32 = arith.constant 9.99999974E-5 : f32
    %62 = vector.broadcast %cst_32 : f32 to vector<8x1xf32>
    %63 = arith.addf %61, %62 : vector<8x1xf32>
    %64 = math.rsqrt %63 : vector<8x1xf32>
    %65 = vector.broadcast %64 : vector<8x1xf32> to vector<8x32xf32>
    %66 = arith.mulf %55, %65 : vector<8x32xf32>
    %67 = vector.broadcast %56 : vector<1x32xf32> to vector<8x32xf32>
    %68 = arith.mulf %66, %67 : vector<8x32xf32>
    %c0_33 = arith.constant 0 : index
    %c0_34 = arith.constant 0 : index
    %c0_35 = arith.constant 0 : index
    %69 = vector.load %arg10[%c0_33, %c0_34, %c0_35] : memref<2x32x256xf32, #tpu.memory_space<vmem>>, vector<1x32x256xf32>
    %70 = vector.shape_cast %69 : vector<1x32x256xf32> to vector<32x256xf32>
    %cst_36 = arith.constant dense<0.000000e+00> : vector<8x256xf32>
    %71 = tpu.matmul %68, %70, %cst_36 {dimension_numbers = #tpu.dot_dimension_numbers<[1], [0], [0], [1], [0, 0, 1, 1], [], []>} : vector<8x32xf32>, vector<32x256xf32>, vector<8x256xf32> -> vector<8x256xf32>
    %72 = vector.extract_strided_slice %71 {offsets = [0, 0], sizes = [8, 128], strides = [1, 1]} : vector<8x256xf32> to vector<8x128xf32>
    %73 = vector.extract_strided_slice %71 {offsets = [0, 128], sizes = [8, 128], strides = [1, 1]} : vector<8x256xf32> to vector<8x128xf32>
    %74 = arith.negf %72 : vector<8x128xf32>
    %75 = math.exp %74 : vector<8x128xf32>
    %cst_37 = arith.constant 1.000000e+00 : f32
    %76 = vector.broadcast %cst_37 : f32 to vector<8x128xf32>
    %77 = arith.addf %76, %75 : vector<8x128xf32>
    %78 = arith.divf %76, %77 : vector<8x128xf32>
    %79 = arith.mulf %72, %78 : vector<8x128xf32>
    %80 = arith.mulf %79, %73 : vector<8x128xf32>
    %c0_38 = arith.constant 0 : index
    %c0_39 = arith.constant 0 : index
    %c0_40 = arith.constant 0 : index
    %81 = vector.load %arg11[%c0_38, %c0_39, %c0_40] : memref<2x128x32xf32, #tpu.memory_space<vmem>>, vector<1x128x32xf32>
    %82 = vector.shape_cast %81 : vector<1x128x32xf32> to vector<128x32xf32>
    %cst_41 = arith.constant dense<0.000000e+00> : vector<8x32xf32>
    %83 = tpu.matmul %80, %82, %cst_41 {dimension_numbers = #tpu.dot_dimension_numbers<[1], [0], [0], [1], [0, 0, 1, 1], [], []>} : vector<8x128xf32>, vector<128x32xf32>, vector<8x32xf32> -> vector<8x32xf32>
    %84 = arith.addf %55, %83 : vector<8x32xf32>
    %85 = vector.extract_strided_slice %35 {offsets = [0, 0], sizes = [8, 32], strides = [1, 1]} : vector<8x128xf32> to vector<8x32xf32>
    %86 = vector.extract_strided_slice %27 {offsets = [0, 0], sizes = [8, 32], strides = [1, 1]} : vector<8x128xf32> to vector<8x32xf32>
    %c1 = arith.constant 1 : index
    %c0_42 = arith.constant 0 : index
    %c0_43 = arith.constant 0 : index
    %87 = vector.load %arg7[%c1, %c0_42, %c0_43] : memref<2x2x32xf32, #tpu.memory_space<vmem>>, vector<1x2x32xf32>
    %88 = vector.shape_cast %87 : vector<1x2x32xf32> to vector<2x32xf32>
    %89 = vector.extract_strided_slice %88 {offsets = [0, 0], sizes = [1, 32], strides = [1, 1]} : vector<2x32xf32> to vector<1x32xf32>
    %90 = arith.mulf %84, %84 : vector<8x32xf32>
    %cst_44 = arith.constant dense<0.000000e+00> : vector<8xf32>
    %91 = vector.multi_reduction <add>, %90, %cst_44 [1] : vector<8x32xf32> to vector<8xf32>
    %92 = vector.shape_cast %91 : vector<8xf32> to vector<8x1xf32>
    %cst_45 = arith.constant 3.200000e+01 : f32
    %93 = vector.broadcast %cst_45 : f32 to vector<8x1xf32>
    %94 = arith.divf %92, %93 : vector<8x1xf32>
    %cst_46 = arith.constant 9.99999974E-5 : f32
    %95 = vector.broadcast %cst_46 : f32 to vector<8x1xf32>
    %96 = arith.addf %94, %95 : vector<8x1xf32>
    %97 = math.rsqrt %96 : vector<8x1xf32>
    %98 = vector.broadcast %97 : vector<8x1xf32> to vector<8x32xf32>
    %99 = arith.mulf %84, %98 : vector<8x32xf32>
    %100 = vector.broadcast %89 : vector<1x32xf32> to vector<8x32xf32>
    %101 = arith.mulf %99, %100 : vector<8x32xf32>
    %c1_47 = arith.constant 1 : index
    %c0_48 = arith.constant 0 : index
    %c0_49 = arith.constant 0 : index
    %102 = vector.load %arg8[%c1_47, %c0_48, %c0_49] : memref<2x32x640xf32, #tpu.memory_space<vmem>>, vector<1x32x640xf32>
    %103 = vector.shape_cast %102 : vector<1x32x640xf32> to vector<32x640xf32>
    %cst_50 = arith.constant dense<0.000000e+00> : vector<8x640xf32>
    %104 = tpu.matmul %101, %103, %cst_50 {dimension_numbers = #tpu.dot_dimension_numbers<[1], [0], [0], [1], [0, 0, 1, 1], [], []>} : vector<8x32xf32>, vector<32x640xf32>, vector<8x640xf32> -> vector<8x640xf32>
    %105 = vector.extract_strided_slice %104 {offsets = [0, 0], sizes = [8, 128], strides = [1, 1]} : vector<8x640xf32> to vector<8x128xf32>
    %106 = vector.extract_strided_slice %104 {offsets = [0, 128], sizes = [8, 128], strides = [1, 1]} : vector<8x640xf32> to vector<8x128xf32>
    %107 = vector.extract_strided_slice %104 {offsets = [0, 256], sizes = [8, 128], strides = [1, 1]} : vector<8x640xf32> to vector<8x128xf32>
    %108 = vector.extract_strided_slice %104 {offsets = [0, 384], sizes = [8, 128], strides = [1, 1]} : vector<8x640xf32> to vector<8x128xf32>
    %109 = vector.extract_strided_slice %104 {offsets = [0, 512], sizes = [8, 128], strides = [1, 1]} : vector<8x640xf32> to vector<8x128xf32>
    %110 = arith.mulf %105, %2 : vector<8x128xf32>
    %111 = arith.mulf %108, %3 : vector<8x128xf32>
    %112 = arith.addf %110, %111 : vector<8x128xf32>
    %113 = arith.mulf %106, %2 : vector<8x128xf32>
    %114 = arith.mulf %109, %3 : vector<8x128xf32>
    %115 = arith.addf %113, %114 : vector<8x128xf32>
    %116 = tpu.concatenate %115, %115, %115, %115 in 0 : vector<8x128xf32>, vector<8x128xf32>, vector<8x128xf32>, vector<8x128xf32> -> vector<32x128xf32>
    %117 = arith.mulf %116, %5 : vector<32x128xf32>
    %118 = tpu.concatenate %107, %107, %107, %107 in 0 : vector<8x128xf32>, vector<8x128xf32>, vector<8x128xf32>, vector<8x128xf32> -> vector<32x128xf32>
    %119 = arith.mulf %118, %5 : vector<32x128xf32>
    "tpu.trace_start"() <{level = 10 : i32, message = "qd,kd->qk"}> : () -> ()
    %cst_51 = arith.constant dense<0.000000e+00> : vector<8x32xf32>
    %120 = tpu.matmul %112, %117, %cst_51 {dimension_numbers = #tpu.dot_dimension_numbers<[1], [1], [0], [0], [0, 0, 1, 0], [], []>} : vector<8x128xf32>, vector<32x128xf32>, vector<8x32xf32> -> vector<8x32xf32>
    "tpu.trace_stop"() : () -> ()
    %cst_52 = arith.constant 0.353553385 : f32
    %121 = vector.broadcast %cst_52 : f32 to vector<8x32xf32>
    %122 = arith.mulf %120, %121 : vector<8x32xf32>
    %123 = arith.addf %122, %4 : vector<8x32xf32>
    %cst_53 = arith.constant dense<0xFF800000> : vector<8xf32>
    %124 = vector.multi_reduction <maximumf>, %123, %cst_53 [1] : vector<8x32xf32> to vector<8xf32>
    %125 = vector.shape_cast %124 : vector<8xf32> to vector<8x1xf32>
    %126 = vector.broadcast %125 : vector<8x1xf32> to vector<8x32xf32>
    %127 = arith.subf %123, %126 : vector<8x32xf32>
    %128 = math.exp %127 : vector<8x32xf32>
    %cst_54 = arith.constant dense<0.000000e+00> : vector<8x32xf32>
    %129 = tpu.matmul %128, %6, %cst_54 {dimension_numbers = #tpu.dot_dimension_numbers<[1], [0], [0], [1], [0, 0, 1, 1], [], []>} : vector<8x32xf32>, vector<32x32xf32>, vector<8x32xf32> -> vector<8x32xf32>
    %130 = arith.divf %128, %129 : vector<8x32xf32>
    %cst_55 = arith.constant dense<0.000000e+00> : vector<8x128xf32>
    %131 = tpu.matmul %130, %119, %cst_55 {dimension_numbers = #tpu.dot_dimension_numbers<[1], [0], [0], [1], [0, 0, 1, 1], [], []>} : vector<8x32xf32>, vector<32x128xf32>, vector<8x128xf32> -> vector<8x128xf32>
    %c1_56 = arith.constant 1 : index
    %c0_57 = arith.constant 0 : index
    %c0_58 = arith.constant 0 : index
    %132 = vector.load %arg9[%c1_56, %c0_57, %c0_58] : memref<2x128x32xf32, #tpu.memory_space<vmem>>, vector<1x128x32xf32>
    %133 = vector.shape_cast %132 : vector<1x128x32xf32> to vector<128x32xf32>
    %cst_59 = arith.constant dense<0.000000e+00> : vector<8x32xf32>
    %134 = tpu.matmul %131, %133, %cst_59 {dimension_numbers = #tpu.dot_dimension_numbers<[1], [0], [0], [1], [0, 0, 1, 1], [], []>} : vector<8x128xf32>, vector<128x32xf32>, vector<8x32xf32> -> vector<8x32xf32>
    %135 = arith.addf %84, %134 : vector<8x32xf32>
    %136 = vector.extract_strided_slice %88 {offsets = [1, 0], sizes = [1, 32], strides = [1, 1]} : vector<2x32xf32> to vector<1x32xf32>
    %137 = arith.mulf %135, %135 : vector<8x32xf32>
    %cst_60 = arith.constant dense<0.000000e+00> : vector<8xf32>
    %138 = vector.multi_reduction <add>, %137, %cst_60 [1] : vector<8x32xf32> to vector<8xf32>
    %139 = vector.shape_cast %138 : vector<8xf32> to vector<8x1xf32>
    %cst_61 = arith.constant 3.200000e+01 : f32
    %140 = vector.broadcast %cst_61 : f32 to vector<8x1xf32>
    %141 = arith.divf %139, %140 : vector<8x1xf32>
    %cst_62 = arith.constant 9.99999974E-5 : f32
    %142 = vector.broadcast %cst_62 : f32 to vector<8x1xf32>
    %143 = arith.addf %141, %142 : vector<8x1xf32>
    %144 = math.rsqrt %143 : vector<8x1xf32>
    %145 = vector.broadcast %144 : vector<8x1xf32> to vector<8x32xf32>
    %146 = arith.mulf %135, %145 : vector<8x32xf32>
    %147 = vector.broadcast %136 : vector<1x32xf32> to vector<8x32xf32>
    %148 = arith.mulf %146, %147 : vector<8x32xf32>
    %c1_63 = arith.constant 1 : index
    %c0_64 = arith.constant 0 : index
    %c0_65 = arith.constant 0 : index
    %149 = vector.load %arg10[%c1_63, %c0_64, %c0_65] : memref<2x32x256xf32, #tpu.memory_space<vmem>>, vector<1x32x256xf32>
    %150 = vector.shape_cast %149 : vector<1x32x256xf32> to vector<32x256xf32>
    %cst_66 = arith.constant dense<0.000000e+00> : vector<8x256xf32>
    %151 = tpu.matmul %148, %150, %cst_66 {dimension_numbers = #tpu.dot_dimension_numbers<[1], [0], [0], [1], [0, 0, 1, 1], [], []>} : vector<8x32xf32>, vector<32x256xf32>, vector<8x256xf32> -> vector<8x256xf32>
    %152 = vector.extract_strided_slice %151 {offsets = [0, 0], sizes = [8, 128], strides = [1, 1]} : vector<8x256xf32> to vector<8x128xf32>
    %153 = vector.extract_strided_slice %151 {offsets = [0, 128], sizes = [8, 128], strides = [1, 1]} : vector<8x256xf32> to vector<8x128xf32>
    %154 = arith.negf %152 : vector<8x128xf32>
    %155 = math.exp %154 : vector<8x128xf32>
    %cst_67 = arith.constant 1.000000e+00 : f32
    %156 = vector.broadcast %cst_67 : f32 to vector<8x128xf32>
    %157 = arith.addf %156, %155 : vector<8x128xf32>
    %158 = arith.divf %156, %157 : vector<8x128xf32>
    %159 = arith.mulf %152, %158 : vector<8x128xf32>
    %160 = arith.mulf %159, %153 : vector<8x128xf32>
    %c1_68 = arith.constant 1 : index
    %c0_69 = arith.constant 0 : index
    %c0_70 = arith.constant 0 : index
    %161 = vector.load %arg11[%c1_68, %c0_69, %c0_70] : memref<2x128x32xf32, #tpu.memory_space<vmem>>, vector<1x128x32xf32>
    %162 = vector.shape_cast %161 : vector<1x128x32xf32> to vector<128x32xf32>
    %cst_71 = arith.constant dense<0.000000e+00> : vector<8x32xf32>
    %163 = tpu.matmul %160, %162, %cst_71 {dimension_numbers = #tpu.dot_dimension_numbers<[1], [0], [0], [1], [0, 0, 1, 1], [], []>} : vector<8x128xf32>, vector<128x32xf32>, vector<8x32xf32> -> vector<8x32xf32>
    %164 = arith.addf %135, %163 : vector<8x32xf32>
    %165 = vector.extract_strided_slice %115 {offsets = [0, 0], sizes = [8, 32], strides = [1, 1]} : vector<8x128xf32> to vector<8x32xf32>
    %166 = vector.extract_strided_slice %107 {offsets = [0, 0], sizes = [8, 32], strides = [1, 1]} : vector<8x128xf32> to vector<8x32xf32>
    %167 = tpu.concatenate %85, %86, %165, %166 in 1 : vector<8x32xf32>, vector<8x32xf32>, vector<8x32xf32>, vector<8x32xf32> -> vector<8x128xf32>
    %c0_72 = arith.constant 0 : index
    %c0_73 = arith.constant 0 : index
    %c0_74 = arith.constant 0 : index
    %168 = vector.load %arg15[%c0_72, %c0_73, %c0_74] : memref<1x8x128xf32, #tpu.memory_space<vmem>>, vector<1x8x128xf32>
    %169 = vector.shape_cast %168 : vector<1x8x128xf32> to vector<8x128xf32>
    %170 = vector.shape_cast %167 : vector<8x128xf32> to vector<1x8x128xf32>
    tpu.vector_store %arg15[%c0_72, %c0_73, %c0_74], %170 {strides = array<i32>} : memref<1x8x128xf32, #tpu.memory_space<vmem>>, vector<1x8x128xf32>,
    %c0_75 = arith.constant 0 : index
    %c0_76 = arith.constant 0 : index
    %171 = vector.load %arg12[%c0_75, %c0_76] : memref<1x32xf32, #tpu.memory_space<vmem>>, vector<1x32xf32>
    %172 = arith.mulf %164, %164 : vector<8x32xf32>
    %cst_77 = arith.constant dense<0.000000e+00> : vector<8xf32>
    %173 = vector.multi_reduction <add>, %172, %cst_77 [1] : vector<8x32xf32> to vector<8xf32>
    %174 = vector.shape_cast %173 : vector<8xf32> to vector<8x1xf32>
    %cst_78 = arith.constant 3.200000e+01 : f32
    %175 = vector.broadcast %cst_78 : f32 to vector<8x1xf32>
    %176 = arith.divf %174, %175 : vector<8x1xf32>
    %cst_79 = arith.constant 9.99999974E-5 : f32
    %177 = vector.broadcast %cst_79 : f32 to vector<8x1xf32>
    %178 = arith.addf %176, %177 : vector<8x1xf32>
    %179 = math.rsqrt %178 : vector<8x1xf32>
    %180 = vector.broadcast %179 : vector<8x1xf32> to vector<8x32xf32>
    %181 = arith.mulf %164, %180 : vector<8x32xf32>
    %182 = vector.broadcast %171 : vector<1x32xf32> to vector<8x32xf32>
    %183 = arith.mulf %181, %182 : vector<8x32xf32>
    %c0_80 = arith.constant 0 : index
    %c0_81 = arith.constant 0 : index
    %184 = vector.load %arg13[%c0_80, %c0_81] : memref<32x128xf32, #tpu.memory_space<vmem>>, vector<32x128xf32>
    %cst_82 = arith.constant dense<0.000000e+00> : vector<8x128xf32>
    %185 = tpu.matmul %183, %184, %cst_82 {dimension_numbers = #tpu.dot_dimension_numbers<[1], [0], [0], [1], [0, 0, 1, 1], [], []>} : vector<8x32xf32>, vector<32x128xf32>, vector<8x128xf32> -> vector<8x128xf32>
    %c0_83 = arith.constant 0 : index
    %c0_84 = arith.constant 0 : index
    %c0_85 = arith.constant 0 : index
    %186 = vector.load %arg14[%c0_83, %c0_84, %c0_85] : memref<1x8x128xf32, #tpu.memory_space<vmem>>, vector<1x8x128xf32>
    %187 = vector.shape_cast %186 : vector<1x8x128xf32> to vector<8x128xf32>
    %188 = vector.shape_cast %185 : vector<8x128xf32> to vector<1x8x128xf32>
    tpu.vector_store %arg14[%c0_83, %c0_84, %c0_85], %188 {strides = array<i32>} : memref<1x8x128xf32, #tpu.memory_space<vmem>>, vector<1x8x128xf32>,
    return
  }
  func.func @transform_0(%arg0: i32) -> (i32, i32, i32) {
    %c0_i32 = arith.constant 0 : i32
    %c0_i32_0 = arith.constant 0 : i32
    %c0_i32_1 = arith.constant 0 : i32
    return %arg0, %c0_i32, %c0_i32_0 : i32, i32, i32
  }
  func.func @transform_1(%arg0: i32) -> (i32, i32) {
    %c0_i32 = arith.constant 0 : i32
    %c0_i32_0 = arith.constant 0 : i32
    %c0_i32_1 = arith.constant 0 : i32
    return %c0_i32, %c0_i32_0 : i32, i32
  }
  func.func @transform_2(%arg0: i32) -> (i32, i32) {
    %c0_i32 = arith.constant 0 : i32
    %c0_i32_0 = arith.constant 0 : i32
    %c0_i32_1 = arith.constant 0 : i32
    return %c0_i32, %c0_i32_0 : i32, i32
  }
  func.func @transform_3(%arg0: i32) -> (i32, i32) {
    %c0_i32 = arith.constant 0 : i32
    %c0_i32_0 = arith.constant 0 : i32
    %c0_i32_1 = arith.constant 0 : i32
    return %c0_i32, %c0_i32_0 : i32, i32
  }
  func.func @transform_4(%arg0: i32) -> (i32, i32) {
    %c0_i32 = arith.constant 0 : i32
    %c0_i32_0 = arith.constant 0 : i32
    %c0_i32_1 = arith.constant 0 : i32
    return %c0_i32, %c0_i32_0 : i32, i32
  }
  func.func @transform_5(%arg0: i32) -> (i32, i32) {
    %c0_i32 = arith.constant 0 : i32
    %c0_i32_0 = arith.constant 0 : i32
    %c0_i32_1 = arith.constant 0 : i32
    return %c0_i32, %c0_i32_0 : i32, i32
  }
  func.func @transform_6(%arg0: i32) -> (i32, i32, i32) {
    %c0_i32 = arith.constant 0 : i32
    %c0_i32_0 = arith.constant 0 : i32
    %c0_i32_1 = arith.constant 0 : i32
    %c0_i32_2 = arith.constant 0 : i32
    return %c0_i32, %c0_i32_0, %c0_i32_1 : i32, i32, i32
  }
  func.func @transform_7(%arg0: i32) -> (i32, i32, i32) {
    %c0_i32 = arith.constant 0 : i32
    %c0_i32_0 = arith.constant 0 : i32
    %c0_i32_1 = arith.constant 0 : i32
    %c0_i32_2 = arith.constant 0 : i32
    return %c0_i32, %c0_i32_0, %c0_i32_1 : i32, i32, i32
  }
  func.func @transform_8(%arg0: i32) -> (i32, i32, i32) {
    %c0_i32 = arith.constant 0 : i32
    %c0_i32_0 = arith.constant 0 : i32
    %c0_i32_1 = arith.constant 0 : i32
    %c0_i32_2 = arith.constant 0 : i32
    return %c0_i32, %c0_i32_0, %c0_i32_1 : i32, i32, i32
  }
  func.func @transform_9(%arg0: i32) -> (i32, i32, i32) {
    %c0_i32 = arith.constant 0 : i32
    %c0_i32_0 = arith.constant 0 : i32
    %c0_i32_1 = arith.constant 0 : i32
    %c0_i32_2 = arith.constant 0 : i32
    return %c0_i32, %c0_i32_0, %c0_i32_1 : i32, i32, i32
  }
  func.func @transform_10(%arg0: i32) -> (i32, i32, i32) {
    %c0_i32 = arith.constant 0 : i32
    %c0_i32_0 = arith.constant 0 : i32
    %c0_i32_1 = arith.constant 0 : i32
    %c0_i32_2 = arith.constant 0 : i32
    return %c0_i32, %c0_i32_0, %c0_i32_1 : i32, i32, i32
  }
  func.func @transform_11(%arg0: i32) -> (i32, i32) {
    %c0_i32 = arith.constant 0 : i32
    %c0_i32_0 = arith.constant 0 : i32
    %c0_i32_1 = arith.constant 0 : i32
    return %c0_i32, %c0_i32_0 : i32, i32
  }
  func.func @transform_12(%arg0: i32) -> (i32, i32) {
    %c0_i32 = arith.constant 0 : i32
    %c0_i32_0 = arith.constant 0 : i32
    %c0_i32_1 = arith.constant 0 : i32
    return %c0_i32, %c0_i32_0 : i32, i32
  }
  func.func @transform_13(%arg0: i32) -> (i32, i32, i32) {
    %c0_i32 = arith.constant 0 : i32
    %c0_i32_0 = arith.constant 0 : i32
    %c0_i32_1 = arith.constant 0 : i32
    return %arg0, %c0_i32, %c0_i32_0 : i32, i32, i32
  }
  func.func @transform_14(%arg0: i32) -> (i32, i32, i32) {
    %c0_i32 = arith.constant 0 : i32
    %c0_i32_0 = arith.constant 0 : i32
    %c0_i32_1 = arith.constant 0 : i32
    return %arg0, %c0_i32, %c0_i32_0 : i32, i32, i32
  }
}

</mosaic_0001>

<bundles_post_ra>
// kernel: tpu_custom_call.1
= control target key start
LH: loop header
LB: loop body
LE: loop exit
PB: predicated region body
PF: predicated region fallthrough
CT: control target
= control target key end

     0   :  { %s4030_s0 = inlined_call_operand.vmem [shape: f32[2,8,32], index: 0, kind: input, shape index: {}]   ;;  %s4031_s1 = inlined_call_operand.vmem [shape: f32[8,128], index: 1, kind: input, shape index: {}]   ;;  %s4032_s2 = inlined_call_operand.vmem [shape: f32[8,128], index: 2, kind: input, shape index: {}]   ;;  %s4033_s3 = inlined_call_operand.hbm [shape: f32[8,32], index: 3, kind: input, shape index: {}]   ;;  %s4034_s4 = inlined_call_operand.vmem [shape: f32[32,128], index: 4, kind: input, shape index: {}]   ;;  %s4035_s5 = inlined_call_operand.vmem [shape: f32[32,32], index: 5, kind: input, shape index: {}]   ;;  %s4036_s6 = inlined_call_operand.vmem [shape: f32[2,2,32], index: 6, kind: input, shape index: {}]   ;;  %s4037_s7 = inlined_call_operand.vmem [shape: f32[2,32,640], index: 7, kind: input, shape index: {}]   ;;  %s4038_s8 = inlined_call_operand.vmem [shape: f32[2,128,32], index: 8, kind: input, shape index: {}]   ;;  %s4039_s9 = inlined_call_operand.vmem [shape: f32[2,32,256], index: 9, kind: input, shape index: {}]   ;;  %s4040_s10 = inlined_call_operand.vmem [shape: f32[2,128,32], index: 10, kind: input, shape index: {}]   ;;  %s4041_s11 = inlined_call_operand.vmem [shape: f32[1,32], index: 11, kind: input, shape index: {}]   ;;  %s4042_s12 = inlined_call_operand.vmem [shape: f32[32,128], index: 12, kind: input, shape index: {}]   ;;  %s4043_s13 = inlined_call_operand.hbm [shape: f32[2,8,128], index: 13, kind: output, shape index: {0}]   ;;  %s4044_s14 = inlined_call_operand.hbm [shape: f32[2,8,128], index: 14, kind: output, shape index: {1}]  }
   0x1   :  { %4054 = sst [smem:[#allocation15_spill]] %s4030_s0 }
   0x2   :  { %4055 = sst [smem:[#allocation16_spill]] %s4031_s1 }
   0x3   :  { %20 = vsyncpa [#allocation3], 0 }
   0x4   :  { %21 = vsyncpa [#allocation4], 0 }
   0x5   :  { %23 = vsyncpa [#allocation4 + $0x1], 0 }
   0x6   :  { %24 = vsyncpa [#allocation7], 0 }
   0x7   :  { %26 = vsyncpa [#allocation7 + $0x1], 0  ;;  %s3226_s29 = smov 0   ;;  %s3228_s30 = smov 0  }
   0x8   :  { %s3230_s15 = smov 0   ;;  %s3232_s16 = smov 0  }
   0x9 LB: > { %4056 = sst [smem:[#allocation11_spill]] %s3136_s15  ;;  %s3247_s17 = sadd.s32 4294967295, %s3140_s16   ;;  %s3140_s16 = sphi %s3232_s16, %s4074_s16   ;;  %s3136_s15 = sphi %s3230_s15, %s4076_s15   ;;  %s3132_s30 = sphi %s3228_s30, %s4078_s30   ;;  %s3128_s29 = sphi %s3226_s29, %s4077_s29  }
   0xa   : > { %s2285_s18 = sadd.s32 4294967294, %s3140_s16   ;;  %s3251_s19 = sadd.s32 1, %s3140_s16  }
   0xb   : > { %4057 = sst [smem:[#allocation12_spill]] %s3251_s19  ;;  %s317_s20 = sadd.s32 1, %s3136_s15 }
   0xc   : > { %s314_s21 = ssub.s32 %s3140_s16, %s3251_s19  ;;  %p327_p0 = scmp.ne.s32.totalorder %s3136_s15, %s3132_s30 }
   0xd   : > { %p315_p1 = scmp.eq.s32.totalorder %s314_s21, 0  ;;  %p328_p2 = scmp.eq.s32.totalorder %s3247_s17, 1 }
   0xe   : > { %p333_p3 = scmp.ne.s32.totalorder %s3132_s30, %s3128_s29  ;;  %p334_p4 = scmp.eq.s32.totalorder %s2285_s18, 1 }
   0xf   : > { %s3262_s22 = scalar_select %p315_p1, %s3136_s15, %s317_s20  }
  0x10   : > { %p3264_p5 = por %p328_p2, %p327_p0  ;;  %p3268_p6 = por %p334_p4, %p333_p3 }
  0x11   : > { %4058 = sst [smem:[#allocation13_spill]] %s3262_s22  ;;  %p2286_p7 = scmp.ge.s32.totalorder %s3140_s16, 1 }
  0x12   : > { %s4059_s23 = scalar_select %p3264_p5, 1, 0 }
  0x13   : > { %s4060_s24 = scalar_select %p3268_p6, 1, 0 }
  0x14   : > { %p367_p8 = scmp.lt.s32.totalorder %s3140_s16, 3  ;;  %p4049_p9 = scmp.eq.s32.totalorder %s3247_s17, 0 }
  0x15   : > { %4061 = sst [smem:[#allocation14_spill]] %s4060_s24  ;;  %s3142_s26 = smov [#allocation2]  }
  0x16   : > { %p3275_p10 = pnand %p2286_p7, %p367_p8  ;;  %s386_s27 = sshll.u32 %s3142_s26, 4  ;;  %s387_s27 = int_to_ptr.vmem [resolvable:$true] %s386_s27 }
  0x17   : > { %s3014_s21 = scalar_lea.hbm %s4033_s3, 128 }
  0x18   : > { %s4062_s25 = scalar_select %p3275_p10, 1, 0 }
  0x19   : > { %p2935_p11 = pneg %p3275_p10  ;;  %p3015_p13 = scmp.ne.s32.totalorder %s4033_s3, %s3014_s21 }
  0x1a   : > { %p3021_p3 = scmp.lt.u32.totalorder %s3014_s21, %s4033_s3 }
  0x1b   : > { %p3283_p12 = pnand %p4049_p9, %p2935_p11 }
  0x1d   : > { %p3016_p0 = pneg %p3283_p12 }
  0x1f   : > { %p3017_p1 = pnand %p3016_p0, %p3015_p13 }
  0x21   : > { %p3018_p2 = pneg %p3017_p1 }
  0x23   : > { %p3023_p4 = pnand %p3021_p3, %p3018_p2 }
  0x25   : > { %3026 = shalt.err (!%p3023_p4)
}
  0x26   : > { %s3027_s24 = scalar_lea.vmem %s387_s27, 128  ;;  %p3035_p9 = scmp.lt.s32.totalorder %s387_s27, %s387_s27 }
  0x27   : > { %p3028_p7 = scmp.ne.s32.totalorder %s387_s27, %s3027_s24  ;;  %p3036_p6 = scmp.lt.s32.totalorder %s3027_s24, %s3027_s24 }
  0x29   : > { %p3030_p8 = pnand %p3028_p7, %p3016_p0  ;;  %p3037_p5 = por %p3036_p6, %p3035_p9 }
  0x2b   : > { %p3031_p11 = pneg %p3030_p8 }
  0x2d   : > { %p3038_p10 = pnand %p3037_p5, %p3031_p11 }
  0x2f   : > { %3041 = shalt.err (!%p3038_p10)
}
  0x30   : > { %2938 = dma.hbm_to_vmem [thread:$0]  (!%p3283_p12), %s4033_s3, 128, %s387_s27, [#allocation3]  }
  0x31   : > { %p4064_p13 = scmp.ne.s32.totalorder %s4062_s25, 0 }
  0x32   : > { %p4065_p1 = scmp.eq.s32.totalorder (!%p4064_p13), %s3247_s17, 0 }
  0x33   : > { %433 = sbr.rel (%p4064_p13) target bundleno = 4554 (0x11ca), region = 72 }
  0x3a   : > { %3115 = dma.done.wait (%p4065_p1), [#allocation3], 128   ;;  %p4066_p0 = pmov %p4065_p1 }
  0x3b   : > { %p483_p6 = scmp.lt.s32.totalorder %s3247_s17, 1  ;;  %s4067_s0 = sld [smem:[#allocation15_spill]]  ;;  %vm501_vm0 = vcmask 261120   ;;  %v516_v3 = vld [vmem:[%s4037_s7 + $0x8] sm:$0xff]  ;;  %v521_v4 = vld [vmem:[%s4037_s7 + $0x30] sm:$0xff]  ;;  %v515_v5 = vld [vmem:[%s4037_s7] sm:$0xff]  ;;  %v510_v31 = vlaneseq }
  0x3c   : > { %3117 = vsyncadd (%p4066_p0), [#allocation3], 4294967168  ;;  %v2729_v6 = vpack.c.bf16 %v521_v4, %v516_v3  ;;  %v520_v7 = vld [vmem:[%s4037_s7 + $0x28] sm:$0xff]  ;;  %v518_v8 = vld [vmem:[%s4037_s7 + $0x18] sm:$0xff]  ;;  %v3143_v10 = vmov 0.0   ;;  %v3144_v28 = vmov 0.0|0.0  }
  0x3d   : > { %s484_s19 = scalar_select %p483_p6, %s3247_s17, 1  ;;  %v523_v9 = vld [vmem:[%s4037_s7 + $0x40] sm:$0xff]  ;;  %602 = vmatprep.mubr.f32.mxu0 %v3143_v10  ;;  %673 = vmatprep.mubr.f32.mxu1 %v3143_v10  ;;  %v2731_v11 = vpack.c.bf16 %v520_v7, %v515_v5  ;;  %v517_v13 = vld [vmem:[%s4037_s7 + $0x10] sm:$0xff]  ;;  %v522_v14 = vld [vmem:[%s4037_s7 + $0x38] sm:$0xff]  ;;  %v3371_v33 = vshrl.u32 %v510_v31, 7  ;;  %vm3145_vm1 = vmmov 0  }
  0x3e   : > { %v2737_v12 = vpack.c.bf16 %v523_v9, %v518_v8  ;;  %v526_v15 = vld [vmem:[%s4037_s7 + $0x58] sm:$0xff]  ;;  %2730 = vmatprep.subr.bf16.mxu0 %v2729_v6  ;;  %v2739_v16 = vpack.c.bf16 %v522_v14, %v517_v13  ;;  %v531_v17 = vld [vmem:[%s4037_s7 + $0x80] sm:$0xff]  ;;  %v525_v18 = vld [vmem:[%s4037_s7 + $0x50] sm:$0xff]  ;;  %s4068_s1 = sld [smem:[#allocation16_spill]]  ;;  %s3147_s18 = smov 96   ;;  %vm2051_vm2 = vcmask 523264  }
  0x3f   : > { %s2293_s24 = sshll.u32 %s484_s19, 3  ;;  %v530_v19 = vld [vmem:[%s4037_s7 + $0x78] sm:$0xff]  ;;  %2732 = vmatpush1.bf16.msra.mxu0 %v2731_v11  ;;  %v2733_v20 = vpack.c.bf16 %v531_v17, %v526_v15  ;;  %v528_v22 = vld [vmem:[%s4037_s7 + $0x68] sm:$0xff]  ;;  %v533_v23 = vld [vmem:[%s4037_s7 + $0x90] sm:$0xff]  ;;  %v512_v34 = vsub.s32 0, %v3371_v33  ;;  %s3148_s21 = smov 64  }
  0x40   : > { %2738 = vmatprep.subr.bf16.mxu1 %v2737_v12  ;;  %v2735_v21 = vpack.c.bf16 %v530_v19, %v525_v18  ;;  %v527_v24 = vld [vmem:[%s4037_s7 + $0x60] sm:$0xff]  ;;  %v2741_v25 = vpack.c.bf16 %v533_v23, %v528_v22  ;;  %v532_v26 = vld [vmem:[%s4037_s7 + $0x88] sm:$0xff]  ;;  %v529_v43 = vld [vmem:[%s4037_s7 + $0x70] sm:$0xff]  ;;  %s3943_s25 = sand.u32 1, %s3132_s30   ;;  %vm2053_vm3 = vcmask 785408   ;;  %s4053_s22 = sshll.u32 %s3247_s17, 7 }
  0x41   : > { %s486_s20 = scalar_lea.vmem %s4067_s0, %s2293_s24  ;;  %2740 = vmatpush1.bf16.msra.mxu1 %v2739_v16  ;;  %2734 = vmatprep.subr.bf16.mxu0 %v2733_v20  ;;  %v2743_v27 = vpack.c.bf16 %v532_v26, %v527_v24  ;;  %v3377_v35 = vld [vmem:[%s4036_s6] sm:$0x3]  ;;  %v524_v38 = vld [vmem:[%s4037_s7 + $0x48] sm:$0xff]  ;;  %v534_v44 = vld [vmem:[%s4037_s7 + $0x98] sm:$0xff]  ;;  %s3146_s24 = smov 32  }
  0x42   : > { %v3314_v0 = vld [vmem:[%s486_s20] sm:$0xff]  ;;  %2742 = vmatprep.subr.bf16.mxu1 %v2741_v25  ;;  %v513_v36 = vrot.slane %v3377_v35, %v512_v34  ;;  %v2749_v45 = vpack.c.bf16 %v534_v44, %v529_v43  ;;  %v3432_v61 = vld [vmem:[%s4034_s4 + $0x8] sm:$0xff]  ;;  %v3446_v3 = vld [vmem:[%s4034_s4 + $0x18] sm:$0xff]  ;;  %s4052_s27 = sshll.u32 %s3943_s25, 3  ;;  %s2156_s20 = scalar_lea.sflag [#allocation7], %s3943_s25 }
  0x43   : > { %v500_v1 = vmul.f32 %v3314_v0, %v3314_v0  ;;  %2736 = vmatpush1.bf16.msra.mxu0 %v2735_v21  ;;  %v519_v37 = vld [vmem:[%s4037_s7 + $0x20] sm:$0xff]  ;;  %v496_v15 = vld [vmem:[%s4035_s5 + $0x8] sm:$0xff]  ;;  %v497_v16 = vld [vmem:[%s4035_s5 + $0x10] sm:$0xff]  ;;  %p4069_p9 = scmp.ne.s32.totalorder %s4059_s23, 0  ;;  %s3149_s26 = smov [#allocation6]  }
  0x44   : > { %2745 = vmatprep.subr.bf16.mxu0 %v3144_v28  ;;  %v2746_v41 = vpack.c.bf16 %v524_v38, %v519_v37  ;;  %v3409_v46 = vld [vmem:[%s4068_s1] sm:$0xff]  ;;  %v498_v18 = vld [vmem:[%s4035_s5 + $0x18] sm:$0xff]  ;;  %v996_v43 = vld [vmem:[%s4038_s8 + $0x30] sm:$0xff]  ;;  %s3046_s15 = sshll.u32 %s3149_s26, 4  ;;  %s3047_s15 = int_to_ptr.vmem [resolvable:$false] %s3046_s15 }
  0x45   : > { %v502_v2 = vsel %vm501_vm0, %v500_v1, 0.0  ;;  %2744 = vmatpush1.bf16.msra.mxu1 %v2743_v27  ;;  %v3414_v47 = vld [vmem:[%s4032_s2] sm:$0xff]  ;;  %v3475_v19 = vpack.c.bf16 %v498_v18, %v497_v16  ;;  %v993_v38 = vld [vmem:[%s4038_s8 + $0x18] sm:$0xff]  ;;  %v1091_v16 = vld [vmem:[%s4039_s9 + $0x8] sm:$0xff]  ;;  %s3048_s0 = scalar_lea.vmem %s3047_s15, 256 }
  0x46   : > { %503 = vadd.xlane.f32.xlu0 %v502_v2  ;;  %2751 = vmatprep.subr.bf16.mxu1 %v3144_v28  ;;  %v3427_v60 = vld [vmem:[%s4034_s4] sm:$0xff]  ;;  %v3441_v2 = vld [vmem:[%s4034_s4 + $0x10] sm:$0xff]  ;;  %v997_v44 = vld [vmem:[%s4038_s8 + $0x38] sm:$0xff] }
  0x47   : > { %v3456_v8 = vld [vmem:[#allocation2] sm:$0xff]  ;;  %v1093_v18 = vld [vmem:[%s4039_s9 + $0x18] sm:$0xff] }
  0x48   : > { %v495_v14 = vld [vmem:[%s4035_s5] sm:$0xff] }
  0x49   : > { %v3469_v17 = vpack.c.bf16 %v496_v15, %v495_v14  ;;  %v990_v31 = vld [vmem:[%s4038_s8] sm:$0xff] }
  0xd3   : > { %v504_v29 = vpop.xlane.xlu0 %503 }
  0xd4   : > { %v506_v30 = vmul.f32 0.03125, %v504_v29 }
  0xd6   : > { %v507_v32 = vadd.f32 0.0001, %v506_v30 }
  0xd8   : > { %2988 = vrsqrt.f32 %v507_v32  ;;  %v991_v32 = vld [vmem:[%s4038_s8 + $0x8] sm:$0xff] }
  0xd9   : > { %v2770_v37 = vpack.c.bf16 %v991_v32, %v990_v31 }
  0xe2   : > { %v2989_v39 = vpop.eup %2988 }
  0xe3   : > { %v509_v40 = vmul.f32 %v2989_v39, %v3314_v0 }
  0xe5   : > { %v514_v42 = vmul.f32 %v513_v36, %v509_v40  ;;  %v992_v36 = vld [vmem:[%s4038_s8 + $0x10] sm:$0xff]  ;;  %v994_v40 = vld [vmem:[%s4038_s8 + $0x20] sm:$0xff] }
  0xe6   : > { %v2773_v39 = vpack.c.bf16 %v993_v38, %v992_v36  ;;  %v1087_v36 = vsub.s32 1, %v3371_v33 }
  0xe7   : > { %2294 = vmatmul.mubr.msk.f32.vlgmr.msra.gmra.mrb[0].mxu0 %vm501_vm0, %v514_v42  ;;  %2295 = vmatmul.mubr.msk.f32.vlgmr.msra.gmra.mrb[0].mxu1 %vm501_vm0, %v514_v42 }
  0xe8   : > { %2747 = vmatpush3.bf16.msra.mxu0 %v2746_v41  ;;  %2498 = vmatprep.mubr.msk.f32.mxu0 %vm3145_vm1, %v3143_v10  ;;  %v995_v41 = vld [vmem:[%s4038_s8 + $0x28] sm:$0xff] }
  0xe9   : > { %2748 = vmatprep.subr.bf16.mxu0 %v3144_v28  ;;  %2509 = vmatprep.mubr.msk.f32.mxu1 %vm3145_vm1, %v3143_v10 }
  0xec   : > { %2750 = vmatpush3.bf16.msra.mxu0 %v2749_v45  ;;  %v2779_v45 = vpack.c.bf16 %v997_v44, %v996_v43  ;;  %v1183_v44 = vld [vmem:[%s4040_s10 + $0x18] sm:$0xff] }
  0xed   : > { %2757 = vmatprep.subr.bf16.mxu0 %v3144_v28 }
  0xef   : > { %2499 = vmatmul.mubr.msk.f32.vlgmr.msra.gmra.mrb[2].mxu0 %vm501_vm0, %v514_v42  ;;  %v2776_v42 = vpack.c.bf16 %v995_v41, %v994_v40  ;;  %v1180_v41 = vld [vmem:[%s4040_s10] sm:$0xff] }
  0xf0   : > { %2520 = vmatprep.mubr.msk.f32.mxu0 %vm3145_vm1, %v3143_v10  ;;  %2759 = vmatpush3.bf16.msra.mxu0 %v3469_v17 }
  0xf1   : > { %2760 = vmatprep.subr.bf16.mxu0 %v3144_v28 }
  0xf4   : > { %2762 = vmatpush3.bf16.msra.mxu0 %v3475_v19 }
  0xf5   : > { %2763 = vmatprep.subr.bf16.mxu0 %v3144_v28 }
 0x1ba   : > { %v604_v48 = vpop.f32.mrb[0].mxu0  ;;  %v3416_v49 = vpop.f32.mrb[0].mxu1 }
 0x1bb   : > { %v750_v50 = vmul.f32 %v604_v48, %v3409_v46  ;;  %v606_v51 = vpop.f32.mrb[1].mxu0  ;;  %v677_v52 = vpop.f32.mrb[1].mxu1  ;;  %v760_v23 = vmul.f32 %v3416_v49, %v3427_v60  ;;  %v761_v24 = vmul.f32 %v3416_v49, %v3432_v61  ;;  %v762_v26 = vmul.f32 %v3416_v49, %v3441_v2  ;;  %v998_v48 = vld [vmem:[%s4038_s8 + $0x40] sm:$0xff] }
 0x1bc   : > { %v751_v53 = vmul.f32 %v677_v52, %v3414_v47  ;;  %v753_v56 = vmul.f32 %v606_v51, %v3409_v46  ;;  %v763_v27 = vmul.f32 %v3416_v49, %v3446_v3  ;;  %v1000_v52 = vld [vmem:[%s4038_s8 + $0x50] sm:$0xff] }
 0x1bd   : > { %v2764_v29 = vpack.c.bf16 %v761_v24, %v760_v23  ;;  %v1095_v23 = vld [vmem:[%s4039_s9 + $0x28] sm:$0xff]  ;;  %v1097_v24 = vld [vmem:[%s4039_s9 + $0x38] sm:$0xff] }
 0x1be   : > { %v752_v54 = vadd.f32 %v751_v53, %v750_v50  ;;  %v2767_v30 = vpack.c.bf16 %v763_v27, %v762_v26  ;;  %v999_v50 = vld [vmem:[%s4038_s8 + $0x48] sm:$0xff]  ;;  %v1001_v53 = vld [vmem:[%s4038_s8 + $0x58] sm:$0xff]  ;;  %v1094_v26 = vld [vmem:[%s4039_s9 + $0x20] sm:$0xff] }
 0x1bf   : > { %v2782_v51 = vpack.c.bf16 %v999_v50, %v998_v48  ;;  %v1096_v27 = vld [vmem:[%s4039_s9 + $0x30] sm:$0xff]  ;;  %v1184_v48 = vld [vmem:[%s4040_s10 + $0x20] sm:$0xff]  ;;  %v1185_v50 = vld [vmem:[%s4040_s10 + $0x28] sm:$0xff] }
 0x1c2   : > { %v746_v55 = vpop.f32.mrb[2].mxu0 }
 0x1c3   : > { %v754_v57 = vmul.f32 %v746_v55, %v3414_v47  ;;  %v2500_v58 = vpop.f32.mrb[3].mxu0  ;;  %v1002_v55 = vld [vmem:[%s4038_s8 + $0x60] sm:$0xff] }
 0x1c4   : > { %v1004_v58 = vld [vmem:[%s4038_s8 + $0x70] sm:$0xff] }
 0x1c5   : > { %v3422_v59 = vadd.f32 %v754_v57, %v753_v56  ;;  %v1003_v56 = vld [vmem:[%s4038_s8 + $0x68] sm:$0xff] }
 0x1c6   : > { %v2788_v57 = vpack.c.bf16 %v1003_v56, %v1002_v55  ;;  %v1188_v55 = vld [vmem:[%s4040_s10 + $0x40] sm:$0xff]  ;;  %v1189_v56 = vld [vmem:[%s4040_s10 + $0x48] sm:$0xff] }
 0x1c7   : > { %v756_v62 = vmul.f32 %v3422_v59, %v3427_v60  ;;  %v757_v63 = vmul.f32 %v3422_v59, %v3432_v61  ;;  %v758_v4 = vmul.f32 %v3422_v59, %v3441_v2  ;;  %v759_v5 = vmul.f32 %v3422_v59, %v3446_v3 }
 0x1c9   : > { %v2752_v1 = vpack.c.bf16 %v757_v63, %v756_v62  ;;  %v2755_v6 = vpack.c.bf16 %v759_v5, %v758_v4  ;;  %v1005_v62 = vld [vmem:[%s4038_s8 + $0x78] sm:$0xff] }
 0x1ca   : > { %v2791_v63 = vpack.c.bf16 %v1005_v62, %v1004_v58  ;;  %v1190_v58 = vld [vmem:[%s4040_s10 + $0x50] sm:$0xff]  ;;  %v1191_v62 = vld [vmem:[%s4040_s10 + $0x58] sm:$0xff] }
 0x1cb   : > { %2753 = vmatpush3.bf16.xpose.msra.mxu1 %v2752_v1 }
 0x1cc   : > { %2754 = vmatprep.subr.bf16.mxu1 %v3144_v28 }
 0x1d3   : > { %2756 = vmatpush3.bf16.xpose.msra.mxu1 %v2755_v6 }
 0x1d4   : > { %2769 = vmatprep.subr.bf16.mxu1 %v3144_v28 }
 0x1da   : > { %2510 = vmatmul.mubr.f32.vlgmr.msra.gmra.mrb[2].mxu1 %v752_v54  ;;  %v2785_v54 = vpack.c.bf16 %v1001_v53, %v1000_v52  ;;  %v1186_v52 = vld [vmem:[%s4040_s10 + $0x30] sm:$0xff]  ;;  %v1187_v53 = vld [vmem:[%s4040_s10 + $0x38] sm:$0xff] }
 0x1db   : > { %2566 = vmatprep.mubr.msk.f32.mxu1 %vm3145_vm1, %v3143_v10  ;;  %2771 = vmatpush3.bf16.msra.mxu1 %v2770_v37  ;;  %v1088_v37 = vrot.slane %v3377_v35, %v1087_v36  ;;  %v1182_v35 = vld [vmem:[%s4040_s10 + $0x10] sm:$0xff] }
 0x1dc   : > { %2772 = vmatprep.subr.bf16.mxu1 %v3144_v28 }
 0x1df   : > { %2774 = vmatpush3.bf16.msra.mxu1 %v2773_v39 }
 0x1e0   : > { %2775 = vmatprep.subr.bf16.mxu1 %v3144_v28 }
 0x1e3   : > { %2777 = vmatpush3.bf16.msra.mxu1 %v2776_v42  ;;  %v1181_v42 = vld [vmem:[%s4040_s10 + $0x8] sm:$0xff] }
 0x1e4   : > { %2778 = vmatprep.subr.bf16.mxu1 %v3144_v28  ;;  %v2802_v43 = vpack.c.bf16 %v1181_v42, %v1180_v41  ;;  %v2312_v42 = vld [vmem:[%s4037_s7 + $0xf0] sm:$0xff] }
 0x1e7   : > { %2780 = vmatpush3.bf16.msra.mxu1 %v2779_v45  ;;  %v2805_v45 = vpack.c.bf16 %v1183_v44, %v1182_v35  ;;  %v2316_v44 = vld [vmem:[%s4037_s7 + $0x110] sm:$0xff] }
 0x1e8   : > { %2781 = vmatprep.subr.bf16.mxu1 %v3144_v28 }
 0x1eb   : > { %2783 = vmatpush3.bf16.msra.mxu1 %v2782_v51  ;;  %v2808_v51 = vpack.c.bf16 %v1185_v50, %v1184_v48  ;;  %v2305_v50 = vld [vmem:[%s4037_s7 + $0xb8] sm:$0xff] }
 0x1ec   : > { %2784 = vmatprep.subr.bf16.mxu1 %v3144_v28 }
 0x1ef   : > { %2786 = vmatpush3.bf16.msra.mxu1 %v2785_v54  ;;  %v2811_v54 = vpack.c.bf16 %v1187_v53, %v1186_v52 }
 0x1f0   : > { %2787 = vmatprep.subr.bf16.mxu1 %v3144_v28 }
 0x1f3   : > { %2789 = vmatpush3.bf16.msra.mxu1 %v2788_v57  ;;  %v2814_v57 = vpack.c.bf16 %v1189_v56, %v1188_v55  ;;  %v3700_v56 = vld [vmem:[%s4036_s6 + $0x2] sm:$0x3] }
 0x1f4   : > { %2790 = vmatprep.subr.bf16.mxu1 %v3144_v28 }
 0x1f7   : > { %2792 = vmatpush3.bf16.msra.mxu1 %v2791_v63  ;;  %v2817_v63 = vpack.c.bf16 %v1191_v62, %v1190_v58  ;;  %v2304_v58 = vld [vmem:[%s4037_s7 + $0xb0] sm:$0xff]  ;;  %v2309_v62 = vld [vmem:[%s4037_s7 + $0xd8] sm:$0xff] }
 0x2ad   : > { %v830_v7 = vpop.f32.mrb[2].mxu1 }
 0x2ae   : > { %v834_v9 = vmul.f32 0.35355338, %v830_v7  ;;  %v2511_v11 = vpop.f32.mrb[3].mxu1 }
 0x2b0   : > { %v835_v12 = vadd.f32 %v834_v9, %v3456_v8 }
 0x2b2   : > { %v836_v13 = vsel %vm501_vm0, %v835_v12, -inf }
 0x2b3   : > { %837 = vmax.xlane.f32.xlu0 %v836_v13 }
 0x340   : > { %v838_v20 = vpop.xlane.xlu0 %837 }
 0x341   : > { %v839_v21 = vsub.f32 %v835_v12, %v838_v20  ;;  %v2793_v20 = vpack.c.bf16 %v1093_v18, %v1091_v16 }
 0x343   : > { %v840_v22 = vmul.f32 1.442695, %v839_v21  ;;  %v1092_v21 = vld [vmem:[%s4039_s9 + $0x10] sm:$0xff] }
 0x345   : > { %2990 = vpow2.f32 %v840_v22 }
 0x34f   : > { %v2991_v25 = vpop.eup %2990 }
 0x350   : > { %2521 = vmatmul.mubr.msk.f32.vlgmr.msra.gmra.mrb[4].mxu0 %vm501_vm0, %v2991_v25 }
 0x351   : > { %2765 = vmatpush3.bf16.msra.mxu0 %v2764_v29  ;;  %2531 = vmatprep.mubr.msk.f32.mxu0 %vm3145_vm1, %v3143_v10  ;;  %v2799_v29 = vpack.c.bf16 %v1096_v27, %v1094_v26  ;;  %v2303_v26 = vld [vmem:[%s4037_s7 + $0xa8] sm:$0xff]  ;;  %v2308_v27 = vld [vmem:[%s4037_s7 + $0xd0] sm:$0xff] }
 0x352   : > { %2766 = vmatprep.subr.bf16.mxu0 %v3144_v28 }
 0x355   : > { %2768 = vmatpush3.bf16.msra.mxu0 %v2767_v30 }
 0x356   : > { %2794 = vmatprep.subr.bf16.mxu0 %v2793_v20 }
 0x423   : > { %v911_v1 = vpop.f32.mrb[4].mxu0 }
 0x424   : > { %2992 = vrcp.f32 %v911_v1  ;;  %v2522_v4 = vpop.f32.mrb[5].mxu0  ;;  %v1192_v1 = vld [vmem:[%s4040_s10 + $0x60] sm:$0xff] }
 0x425   : > { %v1193_v4 = vld [vmem:[%s4040_s10 + $0x68] sm:$0xff] }
 0x42e   : > { %v2993_v5 = vpop.eup %2992 }
 0x42f   : > { %v916_v6 = vmul.f32 %v2993_v5, %v2991_v25  ;;  %v2797_v25 = vpack.c.bf16 %v1097_v24, %v1095_v23  ;;  %v2820_v5 = vpack.c.bf16 %v1193_v4, %v1192_v1  ;;  %v2315_v1 = vld [vmem:[%s4037_s7 + $0x108] sm:$0xff]  ;;  %v2320_v4 = vld [vmem:[%s4037_s7 + $0x130] sm:$0xff] }
 0x431   : > { %2532 = vmatmul.mubr.msk.f32.vlgmr.msra.gmra.mrb[6].mxu0 %vm501_vm0, %v916_v6  ;;  %v1194_v6 = vld [vmem:[%s4040_s10 + $0x70] sm:$0xff] }
 0x432   : > { %1165 = vmatprep.mubr.f32.mxu0 %v3143_v10 }
 0x504   : > { %v986_v7 = vpop.f32.mrb[6].mxu0 }
 0x505   : > { %v2533_v9 = vpop.f32.mrb[7].mxu0  ;;  %2567 = vmatmul.mubr.f32.vlgmr.msra.gmra.mrb[4].mxu1 %v986_v7  ;;  %v1195_v7 = vld [vmem:[%s4040_s10 + $0x78] sm:$0xff] }
 0x506   : > { %1370 = vmatprep.mubr.f32.mxu1 %v3143_v10  ;;  %v2823_v9 = vpack.c.bf16 %v1195_v7, %v1194_v6  ;;  %v2837_v7 = vpack.c.bf16 %v2320_v4, %v2315_v1  ;;  %v2337_v4 = vld [vmem:[%s4038_s8 + $0xd0] sm:$0xff] }
 0x5d8   : > { %v1072_v11 = vpop.f32.mrb[4].mxu1 }
 0x5d9   : > { %v3551_v12 = vadd.f32 %v1072_v11, %v3314_v0  ;;  %v2568_v13 = vpop.f32.mrb[5].mxu1  ;;  %v1090_v0 = vld [vmem:[%s4039_s9] sm:$0xff] }
 0x5da   : > { %v2795_v22 = vpack.c.bf16 %v1092_v21, %v1090_v0 }
 0x5db   : > { %v1077_v14 = vmul.f32 %v3551_v12, %v3551_v12 }
 0x5dc   : > { %2796 = vmatpush1.bf16.msra.mxu0 %v2795_v22 }
 0x5dd   : > { %v1078_v15 = vsel %vm501_vm0, %v1077_v14, 0.0  ;;  %2798 = vmatprep.subr.bf16.mxu0 %v2797_v25 }
 0x5de   : > { %1079 = vadd.xlane.f32.xlu1 %v1078_v15 }
 0x5e0   : > { %2800 = vmatpush1.bf16.msra.mxu0 %v2799_v29  ;;  %v2825_v29 = vpack.c.bf16 %v2308_v27, %v2303_v26 }
 0x5e1   : > { %2801 = vmatprep.subr.bf16.mxu0 %v3144_v28 }
 0x5e2   : > { %2826 = vmatprep.subr.bf16.mxu1 %v2825_v29 }
 0x66b   : > { %v1080_v30 = vpop.xlane.xlu1 %1079 }
 0x66c   : > { %v1081_v31 = vmul.f32 0.03125, %v1080_v30  ;;  %v2307_v30 = vld [vmem:[%s4037_s7 + $0xc8] sm:$0xff] }
 0x66e   : > { %v1082_v32 = vadd.f32 0.0001, %v1081_v31 }
 0x670   : > { %2994 = vrsqrt.f32 %v1082_v32  ;;  %v2306_v32 = vld [vmem:[%s4037_s7 + $0xc0] sm:$0xff] }
 0x67a   : > { %v2995_v38 = vpop.eup %2994 }
 0x67b   : > { %v1084_v39 = vmul.f32 %v2995_v38, %v3551_v12 }
 0x67d   : > { %v1089_v40 = vmul.f32 %v1088_v37, %v1084_v39  ;;  %v2311_v37 = vld [vmem:[%s4037_s7 + $0xe8] sm:$0xff]  ;;  %v2313_v39 = vld [vmem:[%s4037_s7 + $0xf8] sm:$0xff] }
 0x67e   : > { %v2842_v38 = vpack.c.bf16 %v2311_v37, %v2306_v32 }
 0x67f   : > { %2299 = vmatmul.mubr.msk.f32.vlgmr.msra.gmra.mrb[8].mxu0 %vm501_vm0, %v1089_v40  ;;  %v2318_v40 = vld [vmem:[%s4037_s7 + $0x120] sm:$0xff] }
 0x680   : > { %2601 = vmatprep.mubr.msk.f32.mxu0 %vm3145_vm1, %v3143_v10  ;;  %2803 = vmatpush3.bf16.msra.mxu0 %v2802_v43  ;;  %v2829_v41 = vpack.c.bf16 %v2318_v40, %v2313_v39  ;;  %v2317_v43 = vld [vmem:[%s4037_s7 + $0x118] sm:$0xff] }
 0x681   : > { %2804 = vmatprep.subr.bf16.mxu0 %v3144_v28  ;;  %v2831_v35 = vpack.c.bf16 %v2317_v43, %v2312_v42 }
 0x684   : > { %2806 = vmatpush3.bf16.msra.mxu0 %v2805_v45  ;;  %v2321_v45 = vld [vmem:[%s4037_s7 + $0x138] sm:$0xff] }
 0x685   : > { %2807 = vmatprep.subr.bf16.mxu0 %v3144_v28  ;;  %v2845_v48 = vpack.c.bf16 %v2321_v45, %v2316_v44 }
 0x688   : > { %2809 = vmatpush3.bf16.msra.mxu0 %v2808_v51  ;;  %v2310_v51 = vld [vmem:[%s4037_s7 + $0xe0] sm:$0xff] }
 0x689   : > { %2810 = vmatprep.subr.bf16.mxu0 %v3144_v28  ;;  %v2833_v52 = vpack.c.bf16 %v2310_v51, %v2305_v50  ;;  %v2330_v50 = vld [vmem:[%s4038_s8 + $0x98] sm:$0xff] }
 0x68c   : > { %2812 = vmatpush3.bf16.msra.mxu0 %v2811_v54 }
 0x68d   : > { %2813 = vmatprep.subr.bf16.mxu0 %v3144_v28 }
 0x690   : > { %2815 = vmatpush3.bf16.msra.mxu0 %v2814_v57  ;;  %v1280_v57 = vrot.slane %v3700_v56, %v512_v34  ;;  %v2835_v34 = vpack.c.bf16 %v2309_v62, %v2304_v58  ;;  %v2335_v62 = vld [vmem:[%s4038_s8 + $0xc0] sm:$0xff] }
 0x691   : > { %2816 = vmatprep.subr.bf16.mxu0 %v3144_v28 }
 0x694   : > { %2818 = vmatpush3.bf16.msra.mxu0 %v2817_v63 }
 0x695   : > { %2819 = vmatprep.subr.bf16.mxu0 %v3144_v28 }
 0x698   : > { %2821 = vmatpush3.bf16.msra.mxu0 %v2820_v5 }
 0x699   : > { %2822 = vmatprep.subr.bf16.mxu0 %v3144_v28 }
 0x69c   : > { %2824 = vmatpush3.bf16.msra.mxu0 %v2823_v9  ;;  %v2314_v9 = vld [vmem:[%s4037_s7 + $0x100] sm:$0xff] }
 0x69d   : > { %2841 = vmatprep.subr.bf16.mxu0 %v3144_v28 }
 0x752   : > { %v1167_v11 = vpop.f32.mrb[8].mxu0 }
 0x753   : > { %v2300_v13 = vmul.f32 -1.442695, %v1167_v11  ;;  %v1169_v14 = vpop.f32.mrb[9].mxu0 }
 0x755   : > { %2996 = vpow2.f32 %v2300_v13 }
 0x75f   : > { %v2997_v15 = vpop.eup %2996 }
 0x760   : > { %v1175_v16 = vadd.f32 1.0, %v2997_v15 }
 0x762   : > { %2998 = vrcp.f32 %v1175_v16 }
 0x76c   : > { %v2999_v18 = vpop.eup %2998 }
 0x76d   : > { %v1178_v20 = vmul.f32 %v2999_v18, %v1167_v11  ;;  %v2319_v11 = vld [vmem:[%s4037_s7 + $0x128] sm:$0xff] }
 0x76e   : > { %v2839_v13 = vpack.c.bf16 %v2319_v11, %v2314_v9  ;;  %v2341_v11 = vld [vmem:[%s4038_s8 + $0xf0] sm:$0xff] }
 0x76f   : > { %v1179_v0 = vmul.f32 %v1178_v20, %v1169_v14 }
 0x771   : > { %2602 = vmatmul.mubr.f32.vlgmr.msra.gmra.mrb[10].mxu0 %v1179_v0 }
 0x772   : > { %2612 = vmatprep.mubr.msk.f32.mxu0 %vm3145_vm1, %v3143_v10  ;;  %2843 = vmatpush3.bf16.msra.mxu0 %v2842_v38 }
 0x773   : > { %2844 = vmatprep.subr.bf16.mxu0 %v3144_v28 }
 0x776   : > { %2846 = vmatpush3.bf16.msra.mxu0 %v2845_v48 }
 0x777   : > { %2853 = vmatprep.subr.bf16.mxu0 %v3144_v28 }
 0x844   : > { %v1262_v21 = vpop.f32.mrb[10].mxu0 }
 0x845   : > { %v3648_v22 = vadd.f32 %v1262_v21, %v3551_v12  ;;  %v2603_v23 = vpop.f32.mrb[11].mxu0  ;;  %v2302_v12 = vld [vmem:[%s4037_s7 + $0xa0] sm:$0xff] }
 0x846   : > { %v2827_v31 = vpack.c.bf16 %v2307_v30, %v2302_v12 }
 0x847   : > { %v1269_v24 = vmul.f32 %v3648_v22, %v3648_v22 }
 0x848   : > { %2828 = vmatpush1.bf16.msra.mxu1 %v2827_v31 }
 0x849   : > { %v1270_v25 = vsel %vm501_vm0, %v1269_v24, 0.0  ;;  %2830 = vmatprep.subr.bf16.mxu1 %v2829_v41 }
 0x84a   : > { %1271 = vadd.xlane.f32.xlu1 %v1270_v25 }
 0x84c   : > { %2832 = vmatpush1.bf16.msra.mxu1 %v2831_v35 }
 0x84d   : > { %2834 = vmatprep.subr.bf16.mxu1 %v2833_v52  ;;  %v2331_v52 = vld [vmem:[%s4038_s8 + $0xa0] sm:$0xff] }
 0x8d7   : > { %v1272_v53 = vpop.xlane.xlu1 %1271 }
 0x8d8   : > { %v1273_v54 = vmul.f32 0.03125, %v1272_v53  ;;  %v2332_v53 = vld [vmem:[%s4038_s8 + $0xa8] sm:$0xff] }
 0x8da   : > { %v1274_v55 = vadd.f32 0.0001, %v1273_v54  ;;  %v2872_v54 = vpack.c.bf16 %v2332_v53, %v2331_v52  ;;  %v2362_v52 = vld [vmem:[%s4040_s10 + $0xc8] sm:$0xff] }
 0x8dc   : > { %3000 = vrsqrt.f32 %v1274_v55  ;;  %v2333_v55 = vld [vmem:[%s4038_s8 + $0xb0] sm:$0xff] }
 0x8e6   : > { %v3001_v63 = vpop.eup %3000 }
 0x8e7   : > { %v1276_v5 = vmul.f32 %v3001_v63, %v3648_v22  ;;  %v2336_v63 = vld [vmem:[%s4038_s8 + $0xc8] sm:$0xff] }
 0x8e8   : > { %v2878_v1 = vpack.c.bf16 %v2336_v63, %v2335_v62  ;;  %v2366_v62 = vld [vmem:[%s4040_s10 + $0xe8] sm:$0xff] }
 0x8e9   : > { %v1281_v6 = vmul.f32 %v1280_v57, %v1276_v5  ;;  %v2334_v57 = vld [vmem:[%s4038_s8 + $0xb8] sm:$0xff] }
 0x8ea   : > { %v2875_v58 = vpack.c.bf16 %v2334_v57, %v2333_v55  ;;  %v2338_v5 = vld [vmem:[%s4038_s8 + $0xd8] sm:$0xff] }
 0x8eb   : > { %2322 = vmatmul.mubr.msk.f32.vlgmr.msra.gmra.mrb[6].mxu1 %vm501_vm0, %v1281_v6  ;;  %2613 = vmatmul.mubr.msk.f32.vlgmr.msra.gmra.mrb[12].mxu0 %vm501_vm0, %v1281_v6  ;;  %v2364_v55 = vld [vmem:[%s4040_s10 + $0xd8] sm:$0xff] }
 0x8ec   : > { %2836 = vmatpush1.bf16.msra.mxu1 %v2835_v34  ;;  %1441 = vmatprep.mubr.f32.mxu1 %v3143_v10  ;;  %v2881_v34 = vpack.c.bf16 %v2338_v5, %v2337_v4  ;;  %v2368_v4 = vld [vmem:[%s4040_s10 + $0xf8] sm:$0xff] }
 0x8ed   : > { %2838 = vmatprep.subr.bf16.mxu1 %v2837_v7  ;;  %2855 = vmatpush3.bf16.msra.mxu0 %v3469_v17  ;;  %v2340_v7 = vld [vmem:[%s4038_s8 + $0xe8] sm:$0xff] }
 0x8ee   : > { %2856 = vmatprep.subr.bf16.mxu0 %v3144_v28  ;;  %2634 = vmatprep.mubr.msk.f32.mxu0 %vm3145_vm1, %v3143_v10 }
 0x8f0   : > { %2840 = vmatpush1.bf16.msra.mxu1 %v2839_v13  ;;  %v2342_v13 = vld [vmem:[%s4038_s8 + $0xf8] sm:$0xff] }
 0x8f1   : > { %2847 = vmatprep.subr.bf16.mxu1 %v3144_v28  ;;  %2858 = vmatpush3.bf16.msra.mxu0 %v3475_v19 }
 0x8f2   : > { %2859 = vmatprep.subr.bf16.mxu0 %v3144_v28 }
 0x8f3   : > { %2323 = vmatmul.mubr.msk.f32.vlgmr.msra.gmra.mrb[8].mxu1 %vm501_vm0, %v1281_v6  ;;  %v2339_v6 = vld [vmem:[%s4038_s8 + $0xe0] sm:$0xff] }
 0x8f4   : > { %2623 = vmatprep.mubr.msk.f32.mxu1 %vm3145_vm1, %v3143_v10  ;;  %v2884_v9 = vpack.c.bf16 %v2340_v7, %v2339_v6 }
 0x9be   : > { %v1372_v14 = vpop.f32.mrb[6].mxu1  ;;  %v1514_v15 = vpop.f32.mrb[12].mxu0 }
 0x9bf   : > { %v1522_v17 = vmul.f32 %v1514_v15, %v3414_v47  ;;  %v1374_v16 = vpop.f32.mrb[7].mxu1  ;;  %v2614_v18 = vpop.f32.mrb[13].mxu0  ;;  %v1518_v26 = vmul.f32 %v1372_v14, %v3409_v46  ;;  %v2887_v14 = vpack.c.bf16 %v2342_v13, %v2341_v11 }
 0x9c0   : > { %v1521_v20 = vmul.f32 %v1374_v16, %v3409_v46 }
 0x9c2   : > { %v3739_v0 = vadd.f32 %v1522_v17, %v1521_v20 }
 0x9c4   : > { %v1524_v19 = vmul.f32 %v3739_v0, %v3427_v60  ;;  %v1525_v21 = vmul.f32 %v3739_v0, %v3432_v61  ;;  %v1526_v12 = vmul.f32 %v3739_v0, %v3441_v2  ;;  %v1527_v30 = vmul.f32 %v3739_v0, %v3446_v3 }
 0x9c6   : > { %v3745_v23 = vpop.f32.mrb[8].mxu1  ;;  %v2848_v24 = vpack.c.bf16 %v1525_v21, %v1524_v19  ;;  %v2851_v31 = vpack.c.bf16 %v1527_v30, %v1526_v12  ;;  %v2343_v30 = vld [vmem:[%s4039_s9 + $0x40] sm:$0xff] }
 0x9c7   : > { %v1445_v25 = vpop.f32.mrb[9].mxu1  ;;  %v1528_v42 = vmul.f32 %v3745_v23, %v3427_v60  ;;  %v1529_v43 = vmul.f32 %v3745_v23, %v3432_v61  ;;  %v1530_v44 = vmul.f32 %v3745_v23, %v3441_v2  ;;  %v2327_v61 = vld [vmem:[%s4038_s8 + $0x80] sm:$0xff]  ;;  %v2328_v2 = vld [vmem:[%s4038_s8 + $0x88] sm:$0xff] }
 0x9c8   : > { %v1519_v27 = vmul.f32 %v1445_v25, %v3414_v47  ;;  %2849 = vmatpush3.bf16.xpose.msra.mxu1 %v2848_v24  ;;  %v2866_v48 = vpack.c.bf16 %v2328_v2, %v2327_v61  ;;  %v2358_v61 = vld [vmem:[%s4040_s10 + $0xa8] sm:$0xff] }
 0x9c9   : > { %2850 = vmatprep.subr.bf16.mxu1 %v3144_v28  ;;  %v2860_v45 = vpack.c.bf16 %v1529_v43, %v1528_v42  ;;  %v1857_v42 = vrot.slane %v3700_v56, %v1087_v36  ;;  %v2355_v36 = vld [vmem:[%s4040_s10 + $0x90] sm:$0xff] }
 0x9ca   : > { %v1520_v29 = vadd.f32 %v1519_v27, %v1518_v26 }
 0x9d0   : > { %2852 = vmatpush3.bf16.xpose.msra.mxu1 %v2851_v31 }
 0x9d1   : > { %2865 = vmatprep.subr.bf16.mxu1 %v3144_v28 }
 0x9d7   : > { %2624 = vmatmul.mubr.f32.vlgmr.msra.gmra.mrb[10].mxu1 %v1520_v29  ;;  %v2344_v29 = vld [vmem:[%s4039_s9 + $0x48] sm:$0xff] }
 0x9d8   : > { %2680 = vmatprep.mubr.msk.f32.mxu1 %vm3145_vm1, %v3143_v10  ;;  %2867 = vmatpush3.bf16.msra.mxu1 %v2866_v48  ;;  %v2360_v48 = vld [vmem:[%s4040_s10 + $0xb8] sm:$0xff] }
 0x9d9   : > { %2868 = vmatprep.subr.bf16.mxu1 %v3144_v28 }
 0xaaa   : > { %v1598_v46 = vpop.f32.mrb[10].mxu1 }
 0xaab   : > { %v1602_v47 = vmul.f32 0.35355338, %v1598_v46  ;;  %v2625_v32 = vpop.f32.mrb[11].mxu1  ;;  %v2350_v46 = vld [vmem:[%s4039_s9 + $0x78] sm:$0xff] }
 0xaac   : > { %v2347_v32 = vld [vmem:[%s4039_s9 + $0x60] sm:$0xff] }
 0xaad   : > { %v1603_v37 = vadd.f32 %v1602_v47, %v3456_v8  ;;  %v1531_v8 = vmul.f32 %v3745_v23, %v3446_v3  ;;  %v2329_v3 = vld [vmem:[%s4038_s8 + $0x90] sm:$0xff] }
 0xaae   : > { %v2869_v51 = vpack.c.bf16 %v2330_v50, %v2329_v3  ;;  %v2359_v3 = vld [vmem:[%s4040_s10 + $0xb0] sm:$0xff] }
 0xaaf   : > { %v1604_v38 = vsel %vm501_vm0, %v1603_v37, -inf  ;;  %v2863_v60 = vpack.c.bf16 %v1531_v8, %v1530_v44  ;;  %v2353_v8 = vld [vmem:[%s4040_s10 + $0x80] sm:$0xff]  ;;  %v2907_v50 = vpack.c.bf16 %v2360_v48, %v2359_v3 }
 0xab0   : > { %1605 = vmax.xlane.f32.xlu0 %v1604_v38  ;;  %2870 = vmatpush3.bf16.msra.mxu1 %v2869_v51  ;;  %v2361_v51 = vld [vmem:[%s4040_s10 + $0xc0] sm:$0xff] }
 0xab1   : > { %2871 = vmatprep.subr.bf16.mxu1 %v3144_v28  ;;  %v2910_v53 = vpack.c.bf16 %v2362_v52, %v2361_v51 }
 0xab4   : > { %2873 = vmatpush3.bf16.msra.mxu1 %v2872_v54  ;;  %v2363_v54 = vld [vmem:[%s4040_s10 + $0xd0] sm:$0xff] }
 0xab5   : > { %2874 = vmatprep.subr.bf16.mxu1 %v3144_v28  ;;  %v2913_v57 = vpack.c.bf16 %v2364_v55, %v2363_v54 }
 0xab8   : > { %2876 = vmatpush3.bf16.msra.mxu1 %v2875_v58  ;;  %v2365_v58 = vld [vmem:[%s4040_s10 + $0xe0] sm:$0xff] }
 0xab9   : > { %2877 = vmatprep.subr.bf16.mxu1 %v3144_v28  ;;  %v2916_v63 = vpack.c.bf16 %v2366_v62, %v2365_v58 }
 0xabc   : > { %2879 = vmatpush3.bf16.msra.mxu1 %v2878_v1  ;;  %v2367_v1 = vld [vmem:[%s4040_s10 + $0xf0] sm:$0xff] }
 0xabd   : > { %2880 = vmatprep.subr.bf16.mxu1 %v3144_v28  ;;  %v2919_v5 = vpack.c.bf16 %v2368_v4, %v2367_v1 }
 0xac0   : > { %2882 = vmatpush3.bf16.msra.mxu1 %v2881_v34 }
 0xac1   : > { %2883 = vmatprep.subr.bf16.mxu1 %v3144_v28 }
 0xac4   : > { %2885 = vmatpush3.bf16.msra.mxu1 %v2884_v9 }
 0xac5   : > { %2886 = vmatprep.subr.bf16.mxu1 %v3144_v28 }
 0xac8   : > { %2888 = vmatpush3.bf16.msra.mxu1 %v2887_v14 }
 0xac9   : > { %2921 = vmatprep.subr.bf16.mxu1 %v3144_v28 }
 0xb3d   : > { %v1606_v39 = vpop.xlane.xlu0 %1605 }
 0xb3e   : > { %v1607_v40 = vsub.f32 %v1603_v37, %v1606_v39  ;;  %v2349_v37 = vld [vmem:[%s4039_s9 + $0x70] sm:$0xff] }
 0xb3f   : > { %v2895_v38 = vpack.c.bf16 %v2349_v37, %v2347_v32  ;;  %v2369_v32 = vld [vmem:[%s4041_s11] ss:$0 sm:$0xff] }
 0xb40   : > { %v1608_v41 = vmul.f32 1.442695, %v1607_v40 }
 0xb42   : > { %3002 = vpow2.f32 %v1608_v41 }
 0xb4c   : > { %v3003_v35 = vpop.eup %3002 }
 0xb4d   : > { %2635 = vmatmul.mubr.msk.f32.vlgmr.msra.gmra.mrb[14].mxu0 %vm501_vm0, %v3003_v35 }
 0xb4e   : > { %2861 = vmatpush3.bf16.msra.mxu0 %v2860_v45  ;;  %2645 = vmatprep.mubr.msk.f32.mxu0 %vm3145_vm1, %v3143_v10  ;;  %v2354_v45 = vld [vmem:[%s4040_s10 + $0x88] sm:$0xff] }
 0xb4f   : > { %2862 = vmatprep.subr.bf16.mxu0 %v3144_v28  ;;  %v2898_v33 = vpack.c.bf16 %v2354_v45, %v2353_v8 }
 0xb52   : > { %2864 = vmatpush3.bf16.msra.mxu0 %v2863_v60  ;;  %v2357_v60 = vld [vmem:[%s4040_s10 + $0xa0] sm:$0xff] }
 0xb53   : > { %v2904_v2 = vpack.c.bf16 %v2358_v61, %v2357_v60 }
 0xc20   : > { %v1679_v15 = vpop.f32.mrb[14].mxu0 }
 0xc21   : > { %3004 = vrcp.f32 %v1679_v15  ;;  %v2636_v17 = vpop.f32.mrb[15].mxu0 }
 0xc2b   : > { %v3005_v16 = vpop.eup %3004 }
 0xc2c   : > { %v1684_v18 = vmul.f32 %v3005_v16, %v3003_v35 }
 0xc2e   : > { %2646 = vmatmul.mubr.msk.f32.vlgmr.msra.gmra.mrb[16].mxu0 %vm501_vm0, %v1684_v18 }
 0xc2f   : > { %1935 = vmatprep.mubr.f32.mxu0 %v3143_v10 }
 0xd01   : > { %v1754_v20 = vpop.f32.mrb[16].mxu0 }
 0xd02   : > { %v2647_v19 = vpop.f32.mrb[17].mxu0  ;;  %2681 = vmatmul.mubr.f32.vlgmr.msra.gmra.mrb[12].mxu1 %v1754_v20 }
 0xd03   : > { %2726 = vmatprep.mubr.msk.f32.mxu1 %vm3145_vm1, %v3143_v10 }
 0xdd5   : > { %v1841_v21 = vpop.f32.mrb[12].mxu1 }
 0xdd6   : > { %v3832_v24 = vadd.f32 %v1841_v21, %v3648_v22  ;;  %v2682_v25 = vpop.f32.mrb[13].mxu1  ;;  %v2346_v22 = vld [vmem:[%s4039_s9 + $0x58] sm:$0xff]  ;;  %v2072_v21 = vld [vmem:[%s4042_s12] sm:$0xff] }
 0xdd7   : > { %v2889_v12 = vpack.c.bf16 %v2346_v22, %v2344_v29  ;;  %v2073_v25 = vld [vmem:[%s4042_s12 + $0x8] sm:$0xff] }
 0xdd8   : > { %v1846_v26 = vmul.f32 %v3832_v24, %v3832_v24 }
 0xdd9   : > { %2890 = vmatprep.subr.bf16.mxu0 %v2889_v12 }
 0xdda   : > { %v1847_v27 = vsel %vm501_vm0, %v1846_v26, 0.0  ;;  %v2922_v26 = vpack.c.bf16 %v2073_v25, %v2072_v21 }
 0xddb   : > { %1848 = vadd.xlane.f32.xlu1 %v1847_v27 }
 0xddc   : > { %2923 = vmatpush3.bf16.msra.mxu1 %v2922_v26 }
 0xddd   : > { %2924 = vmatprep.subr.bf16.mxu1 %v3144_v28 }
 0xdec   : > { %2039 = vrot.lane.b32.xlu1 %v3416_v49, %s3146_s24  ;;  %v2345_v49 = vld [vmem:[%s4039_s9 + $0x50] sm:$0xff] }
 0xded   : > { %v2891_v31 = vpack.c.bf16 %v2345_v49, %v2343_v30 }
 0xdef   : > { %2892 = vmatpush1.bf16.msra.mxu0 %v2891_v31 }
 0xdf0   : > { %2047 = vrot.lane.b32.xlu1 %v3745_v23, %s3147_s18  ;;  %v2348_v23 = vld [vmem:[%s4039_s9 + $0x68] sm:$0xff]  ;;  %s3960_s18 = scalar_lea.hbm %s4044_s14, %s4053_s22 }
 0xdf1   : > { %v2893_v47 = vpack.c.bf16 %v2350_v46, %v2348_v23 }
 0xdf3   : > { %2894 = vmatprep.subr.bf16.mxu0 %v2893_v47 }
 0xdf4   : > { %2896 = vmatpush1.bf16.msra.mxu0 %v2895_v38 }
 0xdf5   : > { %2897 = vmatprep.subr.bf16.mxu0 %v3144_v28 }
 0xe68   : > { %v1849_v39 = vpop.xlane.xlu1 %1848 }
 0xe69   : > { %v1850_v40 = vmul.f32 0.03125, %v1849_v39 }
 0xe6b   : > { %v1851_v41 = vadd.f32 0.0001, %v1850_v40 }
 0xe6c   : > { %v2040_v29 = vpop.permute.xlu1 %2039 }
 0xe6d   : > { %3006 = vrsqrt.f32 %v1851_v41  ;;  %v2050_v30 = vsel %vm501_vm0, %v3422_v59, %v2040_v29 }
 0xe70   : > { %v2048_v31 = vpop.permute.xlu1 %2047 }
 0xe77   : > { %v3007_v43 = vpop.eup %3006 }
 0xe78   : > { %v1853_v35 = vmul.f32 %v3007_v43, %v3832_v24 }
 0xe7a   : > { %v1858_v44 = vmul.f32 %v1857_v42, %v1853_v35 }
 0xe7c   : > { %2351 = vmatmul.mubr.msk.f32.vlgmr.msra.gmra.mrb[18].mxu0 %vm501_vm0, %v1858_v44 }
 0xe7d   : > { %2715 = vmatprep.mubr.msk.f32.mxu0 %vm3145_vm1, %v3143_v10  ;;  %2899 = vmatpush3.bf16.msra.mxu0 %v2898_v33  ;;  %v2356_v10 = vld [vmem:[%s4040_s10 + $0x98] sm:$0xff] }
 0xe7e   : > { %2900 = vmatprep.subr.bf16.mxu0 %v3144_v28  ;;  %v2901_v56 = vpack.c.bf16 %v2356_v10, %v2355_v36 }
 0xe81   : > { %2902 = vmatpush3.bf16.msra.mxu0 %v2901_v56 }
 0xe82   : > { %2903 = vmatprep.subr.bf16.mxu0 %v3144_v28 }
 0xe85   : > { %2905 = vmatpush3.bf16.msra.mxu0 %v2904_v2 }
 0xe86   : > { %2906 = vmatprep.subr.bf16.mxu0 %v3144_v28 }
 0xe89   : > { %2908 = vmatpush3.bf16.msra.mxu0 %v2907_v50 }
 0xe8a   : > { %2909 = vmatprep.subr.bf16.mxu0 %v3144_v28 }
 0xe8d   : > { %2911 = vmatpush3.bf16.msra.mxu0 %v2910_v53 }
 0xe8e   : > { %2912 = vmatprep.subr.bf16.mxu0 %v3144_v28 }
 0xe91   : > { %2914 = vmatpush3.bf16.msra.mxu0 %v2913_v57 }
 0xe92   : > { %2915 = vmatprep.subr.bf16.mxu0 %v3144_v28 }
 0xe95   : > { %2917 = vmatpush3.bf16.msra.mxu0 %v2916_v63 }
 0xe96   : > { %2918 = vmatprep.subr.bf16.mxu0 %v3144_v28 }
 0xe99   : > { %2920 = vmatpush3.bf16.msra.mxu0 %v2919_v5 }
 0xf4f   : > { %v1937_v34 = vpop.f32.mrb[18].mxu0 }
 0xf50   : > { %v2352_v6 = vmul.f32 -1.442695, %v1937_v34  ;;  %v1939_v7 = vpop.f32.mrb[19].mxu0 }
 0xf52   : > { %3008 = vpow2.f32 %v2352_v6 }
 0xf5c   : > { %v3009_v9 = vpop.eup %3008 }
 0xf5d   : > { %v1945_v11 = vadd.f32 1.0, %v3009_v9 }
 0xf5f   : > { %3010 = vrcp.f32 %v1945_v11 }
 0xf69   : > { %v3011_v13 = vpop.eup %3010 }
 0xf6a   : > { %v1948_v14 = vmul.f32 %v3011_v13, %v1937_v34 }
 0xf6c   : > { %v1949_v15 = vmul.f32 %v1948_v14, %v1939_v7 }
 0xf6e   : > { %2716 = vmatmul.mubr.f32.vlgmr.msra.gmra.mrb[20].mxu0 %v1949_v15 }
0x1041   : > { %v2033_v17 = vpop.f32.mrb[20].mxu0 }
0x1042   : > { %v2037_v16 = vadd.f32 %v2033_v17, %v3832_v24  ;;  %v2717_v18 = vpop.f32.mrb[21].mxu0  ;;  %v2074_v24 = vld [vmem:[%s4042_s12 + $0x10] sm:$0xff] }
0x1044   : > { %v2057_v20 = vmul.f32 %v2037_v16, %v2037_v16 }
0x1046   : > { %v2058_v19 = vsel %vm501_vm0, %v2057_v20, 0.0 }
0x1047   : > { %2059 = vadd.xlane.f32.xlu0 %v2058_v19 }
0x105d   : > { %2043 = vrot.lane.b32.xlu0 %v3739_v0, %s3148_s21  ;;  %v2075_v0 = vld [vmem:[%s4042_s12 + $0x18] sm:$0xff]  ;;  %s482_s21 = scalar_lea.vmem [#allocation6], %s4052_s27 }
0x105e   : > { %v2925_v27 = vpack.c.bf16 %v2075_v0, %v2074_v24  ;;  %s2182_s28 = sshll.u32 %s482_s21, 4  ;;  %s2183_s28 = int_to_ptr.vmem [resolvable:$true] %s2182_s28 }
0x105f   : > { %s3042_s27 = scalar_lea.vmem %s2183_s28, 128  ;;  %p3049_p2 = scmp.lt.s32.totalorder %s2183_s28, %s3047_s15 }
0x1060   : > { %2926 = vmatpush3.bf16.msra.mxu1 %v2925_v27  ;;  %p3043_p5 = scmp.ne.s32.totalorder %s2183_s28, %s3042_s27  ;;  %p3050_p3 = scmp.lt.s32.totalorder %s3048_s0, %s3042_s27 }
0x1062   : > { %p3044_p10 = pnand %p3043_p5, %p4069_p9  ;;  %p3051_p4 = por %p3050_p3, %p3049_p2 }
0x1064   : > { %p3045_p12 = pneg %p3044_p10 }
0x1066   : > { %p3052_p7 = pnand %p3051_p4, %p3045_p12 }
0x10d4   : > { %v2060_v22 = vpop.xlane.xlu0 %2059 }
0x10d5   : > { %v2061_v12 = vmul.f32 0.03125, %v2060_v22 }
0x10d7   : > { %v2062_v28 = vadd.f32 0.0001, %v2061_v12 }
0x10d8   : > { %v2044_v49 = vpop.permute.xlu0 %2043 }
0x10d9   : > { %3012 = vrsqrt.f32 %v2062_v28  ;;  %v2052_v23 = vsel %vm2051_vm2, %v2050_v30, %v2044_v49 }
0x10da   : > { %v2054_v46 = vsel %vm2053_vm3, %v2052_v23, %v2048_v31 }
0x10db   : > { %2055 = vst [vmem:[%s482_s21] sm:$0xff] %v2054_v46 }
0x10e3   : > { %v3013_v47 = vpop.eup %3012 }
0x10e4   : > { %v2064_v37 = vmul.f32 %v3013_v47, %v2037_v16 }
0x10e6   : > { %v2071_v38 = vmul.f32 %v2369_v32, %v2064_v37 }
0x10e8   : > { %2727 = vmatmul.mubr.msk.f32.vlgmr.msra.gmra.mrb[14].mxu1 %vm501_vm0, %v2071_v38 }
0x10e9   : > { %3055 = shalt.err (!%p3052_p7)
}
0x10ea   : > { %s3056_s21 = scalar_lea.hbm %s3960_s18, 128  ;;  %s3060_s26 = scalar_lea.hbm %s4044_s14, 256 }
0x10eb   : > { %p3057_p8 = scmp.ne.s32.totalorder %s3960_s18, %s3056_s21  ;;  %p3061_p1 = scmp.lt.u32.totalorder %s3960_s18, %s4044_s14 }
0x10ec   : > { %p3062_p0 = scmp.lt.u32.totalorder %s3060_s26, %s3056_s21  ;;  %p3064_p5 = scmp.lt.u32.totalorder %s3056_s21, %s3960_s18 }
0x10ed   : > { %p3058_p11 = pnand %p3057_p8, %p4069_p9 }
0x10ee   : > { %p3063_p6 = por %p3062_p0, %p3061_p1 }
0x10ef   : > { %p3059_p13 = pneg %p3058_p11 }
0x10f0   : > { %p3065_p10 = por %p3064_p5, %p3063_p6 }
0x10f2   : > { %p3066_p12 = pnand %p3065_p10, %p3059_p13 }
0x10f4   : > { %3069 = shalt.err (!%p3066_p12)
}
0x10f5   : > { %2932 = dma.vmem_to_hbm [thread:$0]  (%p4069_p9), %s2183_s28, 128, %s3960_s18, %s2156_s20  }
0x10f6   : > { %s4070_s0 = sshll.u32 %s3943_s25, 3  ;;  %s4071_s22 = sshll.u32 %s3247_s17, 7 }
0x10f7   : > { %s475_s27 = scalar_lea.vmem [#allocation5], %s4070_s0  ;;  %s3989_s21 = scalar_lea.hbm %s4043_s13, %s4071_s22 }
0x10f8   : > { %s2169_s19 = sshll.u32 %s475_s27, 4  ;;  %s2151_s15 = scalar_lea.sflag [#allocation4], %s3943_s25  ;;  %s3982_s19 = int_to_ptr.vmem [resolvable:$true] %s2169_s19 }
0x10f9   : > { %s3070_s1 = scalar_lea.vmem %s3982_s19, 128  ;;  %s3150_s18 = smov [#allocation5]  }
0x10fa   : > { %p3071_p2 = scmp.ne.s32.totalorder %s3982_s19, %s3070_s1  ;;  %s3074_s28 = sshll.u32 %s3150_s18, 4  ;;  %s3075_s28 = int_to_ptr.vmem [resolvable:$false] %s3074_s28 }
0x10fb   : > { %s3076_s17 = scalar_lea.vmem %s3075_s28, 256  ;;  %p3077_p7 = scmp.lt.s32.totalorder %s3982_s19, %s3075_s28 }
0x10fc   : > { %p3072_p3 = pnand %p3071_p2, %p4069_p9  ;;  %p3078_p8 = scmp.lt.s32.totalorder %s3076_s17, %s3070_s1 }
0x10fe   : > { %p3073_p4 = pneg %p3072_p3  ;;  %p3079_p11 = por %p3078_p8, %p3077_p7 }
0x1100   : > { %p3080_p13 = pnand %p3079_p11, %p3073_p4 }
0x11bb   : > { %v2145_v59 = vpop.f32.mrb[14].mxu1 }
0x11bc   : > { %2149 = vst [vmem:[%s475_s27] sm:$0xff] %v2145_v59  ;;  %v2728_v39 = vpop.f32.mrb[15].mxu1 }
0x11bd   : > { %3083 = shalt.err (!%p3080_p13)
}
0x11be   : > { %s3084_s25 = scalar_lea.hbm %s3989_s21, 128  ;;  %s3088_s27 = scalar_lea.hbm %s4043_s13, 256 }
0x11bf   : > { %p3085_p1 = scmp.ne.s32.totalorder %s3989_s21, %s3084_s25  ;;  %p3089_p5 = scmp.lt.u32.totalorder %s3989_s21, %s4043_s13 }
0x11c0   : > { %p3090_p10 = scmp.lt.u32.totalorder %s3088_s27, %s3084_s25  ;;  %p3092_p2 = scmp.lt.u32.totalorder %s3084_s25, %s3989_s21 }
0x11c1   : > { %p3086_p0 = pnand %p3085_p1, %p4069_p9 }
0x11c2   : > { %p3091_p12 = por %p3090_p10, %p3089_p5 }
0x11c3   : > { %p3087_p6 = pneg %p3086_p0 }
0x11c4   : > { %p3093_p3 = por %p3092_p2, %p3091_p12 }
0x11c6   : > { %p3094_p4 = pnand %p3093_p3, %p3087_p6 }
0x11c8   : > { %3097 = shalt.err (!%p3094_p4)
}
0x11c9   : > { %2931 = dma.vmem_to_hbm [thread:$0]  (%p4069_p9), %s3982_s19, 128, %s3989_s21, %s2151_s15  }
0x11ca PF: > { %s4072_s1 = sld [smem:[#allocation14_spill]]  ;;  %p2948_p7 = scmp.ge.s32.totalorder %s3140_s16, 2 }
0x11cb   : > { %s2194_s26 = sand.u32 1, %s3128_s29  }
0x11cc   : > { %s2195_s18 = scalar_lea.sflag [#allocation4], %s2194_s26 }
0x11d0   : > { %p4073_p8 = scmp.ne.s32.totalorder %s4072_s1, 0 }
0x11d2   : > { %p2940_p11 = pnand %p2948_p7, %p4073_p8 }
0x11d4   : > { %3119 = dma.done.wait (!%p2940_p11), %s2195_s18, 128  }
0x11d5   : > { %3121 = vsyncadd (!%p2940_p11), %s2195_s18, 4294967168  ;;  %s2204_s28 = scalar_lea.sflag [#allocation7], %s2194_s26 }
0x11d6   : > { %3123 = dma.done.wait (!%p2940_p11), %s2204_s28, 128  }
0x11d7   : > { %3125 = vsyncadd (!%p2940_p11), %s2204_s28, 4294967168  ;;  %s4074_s16 = sld [smem:[#allocation12_spill]]  ;;  %s4075_s23 = sld [smem:[#allocation11_spill]] }
0x11d8   : > { %s4076_s15 = sld [smem:[#allocation13_spill]]  ;;  %s4077_s29 = smov %s3132_s30 }
0x11dd   : > { %p29_p9 = scmp.ge.s32.totalorder %s4074_s16, 4   ;;  %s4078_s30 = smov %s4075_s23 }
0x11df   :  { %31 = sbr.rel (!%p29_p9) target bundleno = 9 (0x9), region = 134 }
0x11e6   :  { %2209 = vsyncpa [#allocation3], 1 }
0x11e7   :  { %2211 = vsyncpa [#allocation3 + $0x1], 1 }
0x11e8   :  { %2212 = vsyncpa [#allocation4], 1 }
0x11e9   :  { %2214 = vsyncpa [#allocation4 + $0x1], 1 }
0x11ea   :  { %2215 = vsyncpa [#allocation7], 1 }
0x11eb   :  { %2217 = vsyncpa [#allocation7 + $0x1], 1 }

</bundles_post_ra>
